<compile_context>
chip_gen: v7x
topology: tpu7x:2x2x1
jax: 0.10.0
libtpu: 0.0.40
codegen_flags: <defaults>
</compile_context>

<pallas_src>
import math
import functools

import jax
import jax.numpy as jnp
from jax.experimental import pallas as pl
from jax.experimental.pallas import tpu as pltpu

INV_SQRT2 = 1.0 / math.sqrt(2.0)


def _residual_block_kernel(d, TT, C, E, T, HW, mm_dtype,
                           xc_ref,     # (1, C, TT)  x dtype: current time tile
                           xl_ref,     # (1, C, HW)  x dtype: 128-block ending at tile start
                           xr_ref,     # (1, C, HW)  x dtype: 128-block starting at tile end
                           cond_ref,   # (1, E, TT)  mm_dtype
                           dproj_ref,  # (1, C, 1)   f32 (per-batch diffusion projection)
                           wz_ref,     # (2C, 3C+E)  mm_dtype  [w_dil k0 | k1 | k2 | w_cond]
                           wout_ref,   # (2C, C)     mm_dtype
                           bz_ref,     # (2C, 1)     f32 (b_dil + b_cond)
                           bout_ref,   # (2C, 1)     f32
                           res_ref,    # (1, C, TT)
                           skip_ref,   # (1, C, TT)
                           rhs_ref):   # VMEM (3C+E, TT) mm_dtype: merged matmul RHS
    j = pl.program_id(1)
    t0 = j * TT                                   # global start of this time tile

    xc = xc_ref[0].astype(jnp.float32)            # (C, TT)
    dproj = dproj_ref[0].astype(jnp.float32)      # (C, 1)

    # y = x + diffusion_projection, zeroed outside [0, T): reproduces both the
    # conv's zero padding and the partial last tile (whose garbage columns are
    # never written back anyway).
    lane = jax.lax.broadcasted_iota(jnp.int32, (1, TT), 1)
    valid_c = (t0 + lane) < T
    yc = jnp.where(valid_c, xc + dproj, 0.0).astype(mm_dtype)       # (C, TT)

    lane_d = jax.lax.broadcasted_iota(jnp.int32, (1, d), 1)
    # Right halo: first d columns of the 128-block starting at t0 + TT.
    valid_r = (t0 + TT + lane_d) < T
    xr = xr_ref[0, :, 0:d].astype(jnp.float32)
    yr = jnp.where(valid_r, xr + dproj, 0.0).astype(mm_dtype)       # (C, d)
    # Left halo: last d columns of the 128-block ending at t0.
    valid_l = (t0 - d + lane_d) >= 0
    xl = xl_ref[0, :, HW - d:HW].astype(jnp.float32)
    yl = jnp.where(valid_l, xl + dproj, 0.0).astype(mm_dtype)       # (C, d)

    # Stage the merged matmul RHS in persistent VMEM (fully overwritten each
    # step, so there is no cross-step dependence):
    #   rows [0,   C)    : y[t - d]    (conv tap k = 0)
    #   rows [C,  2C)    : y[t]        (conv tap k = 1)
    #   rows [2C, 3C)    : y[t + d]    (conv tap k = 2)
    #   rows [3C, 3C+E)  : conditioner (folded 1x1 conv)
    rhs_ref[0:C, 0:d] = yl
    rhs_ref[0:C, d:TT] = yc[:, 0:TT - d]
    rhs_ref[C:2 * C, :] = yc
    rhs_ref[2 * C:3 * C, 0:TT - d] = yc[:, d:TT]
    rhs_ref[2 * C:3 * C, TT - d:TT] = yr
    rhs_ref[3 * C:3 * C + E, :] = cond_ref[0]

    # One MXU matmul for dilated conv + conditioner projection (K = 3C+E).
    z = (jnp.dot(wz_ref[...], rhs_ref[...], preferred_element_type=jnp.float32)
         + bz_ref[...])                                             # (2C, TT) f32

    # sigmoid(gate) * tanh(filter); sigmoid via tanh keeps EUP traffic to two
    # tanh pushes per tile (v5e has a single, non-bf16 EUP).
    gate = 0.5 * (jnp.tanh(0.5 * z[:C, :]) + 1.0)
    h = (gate * jnp.tanh(z[C:, :])).astype(mm_dtype)                # (C, TT)

    o = (jnp.dot(wout_ref[...], h, preferred_element_type=jnp.float32)
         + bout_ref[...])                                           # (2C, TT) f32

    res_ref[0] = ((xc + o[:C, :]) * INV_SQRT2).astype(res_ref.dtype)
    skip_ref[0] = o[C:, :].astype(skip_ref.dtype)


def residual_block_forward(x_nct, cond_net, diff_step, params, *, dilation,
                           time_tile=2048, matmul_dtype=jnp.bfloat16):
    """x_nct: (B, C, T), cond_net: (B, E, T), diff_step: (B, C) -> (residual, skip) in NCT."""
    B, C, T = x_nct.shape
    E = cond_net.shape[1]
    d = int(dilation)
    assert 0 < d < 128, "halo scheme assumes dilation < 128"
    assert time_tile % 128 == 0 and time_tile >= 128

    HW = 128                                       # halo block width (one lane tile)
    # Largest time tile <= requested that is a multiple of 128 and (when T
    # allows) does not exceed T.  Pallas handles the partial last tile.
    TT = min(int(time_tile), max(HW, (T // HW) * HW))
    assert TT > d
    nT = pl.cdiv(T, TT)
    tpb = TT // HW                                 # 128-blocks per time tile
    nhb = pl.cdiv(T, HW)                           # 128-blocks along T

    # diffusion_projection hoisted out of the kernel (tiny (B,C)@(C,C) matmul).
    dproj = (diff_step @ params["w_diff"].T + params["b_diff"]) \
        .astype(jnp.float32).reshape(B, C, 1)

    # Weight prep: fold the 3 conv taps along K and merge the conditioner
    # projection into the same matmul.
    wdil3 = jnp.transpose(params["w_dil"], (0, 2, 1)).reshape(2 * C, 3 * C)
    wz = jnp.concatenate([wdil3, params["w_cond"][:, :, 0]], axis=1) \
        .astype(matmul_dtype)                                       # (2C, 3C+E)
    wout = params["w_out"][:, :, 0].astype(matmul_dtype)            # (2C, C)
    bz = (params["b_dil"] + params["b_cond"]).reshape(2 * C, 1).astype(jnp.float32)
    bout = params["b_out"].reshape(2 * C, 1).astype(jnp.float32)
    cond_mm = cond_net.astype(matmul_dtype)        # halve conditioner DMA bytes

    # VMEM budget (double-buffered blocks + persistent RHS scratch), clamped to
    # 48 MiB so the same config also fits v7x's 64 MiB physical VMEM.
    bx = jnp.dtype(x_nct.dtype).itemsize
    bm = jnp.dtype(matmul_dtype).itemsize
    vmem_est = 2 * (C * TT * bx + 2 * C * HW * bx + E * TT * bm + 2 * C * TT * bx)
    vmem_est += (3 * C + E) * TT * bm + 8 * C * (4 * C + E) * bm
    vmem_limit = int(min(48 * 1024 * 1024, max(4 * vmem_est, 16 * 1024 * 1024)))

    kernel = functools.partial(_residual_block_kernel, d, TT, C, E, T, HW,
                               matmul_dtype)

    def center_map(b, j):
        return (b, 0, j)

    def lhalo_map(b, j):
        return (b, 0, jnp.maximum(j * tpb - 1, 0))

    def rhalo_map(b, j):
        return (b, 0, jnp.minimum((j + 1) * tpb, nhb - 1))

    res, skip = pl.pallas_call(
        kernel,
        out_shape=(jax.ShapeDtypeStruct((B, C, T), x_nct.dtype),
                   jax.ShapeDtypeStruct((B, C, T), x_nct.dtype)),
        grid_spec=pltpu.PrefetchScalarGridSpec(
            num_scalar_prefetch=0,
            grid=(B, nT),
            in_specs=[
                pl.BlockSpec((1, C, TT), center_map),                   # x current tile
                pl.BlockSpec((1, C, HW), lhalo_map),                    # x left-halo block
                pl.BlockSpec((1, C, HW), rhalo_map),                    # x right-halo block
                pl.BlockSpec((1, E, TT), center_map),                   # conditioner (mm dtype)
                pl.BlockSpec((1, C, 1), lambda b, j: (b, 0, 0)),        # diffusion proj
                pl.BlockSpec((2 * C, 3 * C + E), lambda b, j: (0, 0)),  # W_z
                pl.BlockSpec((2 * C, C), lambda b, j: (0, 0)),          # W_out
                pl.BlockSpec((2 * C, 1), lambda b, j: (0, 0)),          # b_dil + b_cond
                pl.BlockSpec((2 * C, 1), lambda b, j: (0, 0)),          # b_out
            ],
            out_specs=[
                pl.BlockSpec((1, C, TT), center_map),                   # residual
                pl.BlockSpec((1, C, TT), center_map),                   # skip
            ],
            scratch_shapes=[
                pltpu.VMEM((3 * C + E, TT), matmul_dtype),              # merged matmul RHS
            ],
        ),
        compiler_params=pltpu.CompilerParams(
            # No cross-step carry (halo comes straight from HBM), so both axes
            # are parallel -> megacore can split time even when B == 1 (v7x).
            dimension_semantics=("parallel", "parallel"),
            vmem_limit_bytes=vmem_limit,
        ),
    )(x_nct, x_nct, x_nct, cond_mm, dproj, wz, wout, bz, bout)
    return res, skip


def reference_forward(x, cond, diff, params, dilation):
    """Plain-JAX reference matching the PyTorch module semantics (NCT layout)."""
    C = params["w_diff"].shape[0]
    d_proj = diff @ params["w_diff"].T + params["b_diff"]            # (B, C)
    y = x + d_proj[:, :, None]                                       # (B, C, T)
    conv = jax.lax.conv_general_dilated(
        y, params["w_dil"], window_strides=(1,),
        padding=[(dilation, dilation)], rhs_dilation=(dilation,),
        dimension_numbers=("NCH", "OIH", "NCH"))
    conv = conv + params["b_dil"][None, :, None]
    cond_p = (jnp.einsum("bet,oe->bot", cond, params["w_cond"][:, :, 0])
              + params["b_cond"][None, :, None])
    z = conv + cond_p
    gate, filt = z[:, :C], z[:, C:]
    h = jax.nn.sigmoid(gate) * jnp.tanh(filt)
    o = (jnp.einsum("bct,oc->bot", h, params["w_out"][:, :, 0])
         + params["b_out"][None, :, None])
    residual, skip = o[:, :C], o[:, C:]
    return (x + residual) / math.sqrt(2.0), skip


if __name__ == "__main__":
    # residual_channels=32, encoder_hidden=16
    B, C, E = 2, 32, 16
    key = jax.random.PRNGKey(0)
    kp = jax.random.split(key, 8)

    params = {
        "w_diff": 0.1 * jax.random.normal(kp[0], (C, C), jnp.float32),
        "b_diff": 0.1 * jax.random.normal(kp[1], (C,), jnp.float32),
        "w_dil":  0.1 * jax.random.normal(kp[2], (2 * C, C, 3), jnp.float32),
        "b_dil":  0.1 * jax.random.normal(kp[3], (2 * C,), jnp.float32),
        "w_cond": 0.1 * jax.random.normal(kp[4], (2 * C, E, 1), jnp.float32),
        "b_cond": 0.1 * jax.random.normal(kp[5], (2 * C,), jnp.float32),
        "w_out":  0.1 * jax.random.normal(kp[6], (2 * C, C, 1), jnp.float32),
        "b_out":  0.1 * jax.random.normal(kp[7], (2 * C,), jnp.float32),
    }

    cases = [
        # (T, time_tile, dilation, matmul_dtype, tol)
        (384, 2048, 1, jnp.float32, 1e-4),    # one time tile per batch row
        (384, 128, 2, jnp.float32, 1e-4),     # 3 tiles: exercises both halo paths
        (320, 256, 4, jnp.float32, 1e-4),     # T % 128 != 0: partial last blocks
        (2560, 2048, 2, jnp.bfloat16, 5e-2),  # large-tile bf16 MXU path, 2 tiles
    ]

    for idx, (T, tt, dil, mmdt, tol) in enumerate(cases):
        kx, kc, kd = jax.random.split(jax.random.fold_in(key, idx), 3)
        x = jax.random.normal(kx, (B, C, T), jnp.float32)             # (B, C, T)
        conditioner = jax.random.normal(kc, (B, E, T), jnp.float32)   # (B, E, T)
        diffusion_step = jax.random.normal(kd, (B, C), jnp.float32)   # (B, C)

        res_exp, skip_exp = reference_forward(x, conditioner, diffusion_step,
                                              params, dil)
        res, skip = residual_block_forward(x, conditioner, diffusion_step,
                                           params, dilation=dil,
                                           time_tile=tt, matmul_dtype=mmdt)
        res, skip = jax.block_until_ready((res, skip))

        assert res.shape == (B, C, T) and skip.shape == (B, C, T)
        assert jnp.allclose(res, res_exp, atol=tol, rtol=tol), \
            f"residual mismatch (case {idx}: T={T}, TT={tt}, d={dil}, {mmdt})"
        assert jnp.allclose(skip, skip_exp, atol=tol, rtol=tol), \
            f"skip mismatch (case {idx}: T={T}, TT={tt}, d={dil}, {mmdt})"

    print("KERNEL_OK")
</pallas_src>

<mosaic_0001>
module attributes {stable_mosaic.version = 11 : i64} {
  func.func @_residual_block_kernel(%arg0: i32, %arg1: i32, %arg2: memref<1x32x384xf32, #tpu.memory_space<vmem>>, %arg3: memref<1x32x128xf32, #tpu.memory_space<vmem>>, %arg4: memref<1x32x128xf32, #tpu.memory_space<vmem>>, %arg5: memref<1x16x384xf32, #tpu.memory_space<vmem>>, %arg6: memref<1x32x1xf32, #tpu.memory_space<vmem>>, %arg7: memref<64x112xf32, #tpu.memory_space<vmem>>, %arg8: memref<64x32xf32, #tpu.memory_space<vmem>>, %arg9: memref<64x1xf32, #tpu.memory_space<vmem>>, %arg10: memref<64x1xf32, #tpu.memory_space<vmem>>, %arg11: memref<1x32x384xf32, #tpu.memory_space<vmem>>, %arg12: memref<1x32x384xf32, #tpu.memory_space<vmem>>, %arg13: memref<112x384xf32, #tpu.memory_space<vmem>>) attributes {dimension_semantics = [#tpu.dimension_semantics<parallel>, #tpu.dimension_semantics<parallel>], iteration_bounds = array<i64: 2, 1>, scalar_prefetch = 0 : i64, scratch_operands = 1 : i64, tpu.core_type = #tpu.core_type<tc>, window_params = [{transform_indices = @transform_0, window_bounds = array<i64: 1, 32, 384>}, {transform_indices = @transform_1, window_bounds = array<i64: 1, 32, 128>}, {transform_indices = @transform_2, window_bounds = array<i64: 1, 32, 128>}, {transform_indices = @transform_3, window_bounds = array<i64: 1, 16, 384>}, {transform_indices = @transform_4, window_bounds = array<i64: 1, 32, 1>}, {pipeline_mode = #tpu.pipeline_mode<synchronous>, transform_indices = @transform_5, window_bounds = array<i64: 64, 112>}, {pipeline_mode = #tpu.pipeline_mode<synchronous>, transform_indices = @transform_6, window_bounds = array<i64: 64, 32>}, {pipeline_mode = #tpu.pipeline_mode<synchronous>, transform_indices = @transform_7, window_bounds = array<i64: 64, 1>}, {pipeline_mode = #tpu.pipeline_mode<synchronous>, transform_indices = @transform_8, window_bounds = array<i64: 64, 1>}, {transform_indices = @transform_9, window_bounds = array<i64: 1, 32, 384>}, {transform_indices = @transform_10, window_bounds = array<i64: 1, 32, 384>}]} {
    %c384_i32 = arith.constant 384 : i32
    %0 = arith.muli %arg1, %c384_i32 : i32
    %c0 = arith.constant 0 : index
    %c0_0 = arith.constant 0 : index
    %c0_1 = arith.constant 0 : index
    %1 = vector.load %arg2[%c0, %c0_0, %c0_1] : memref<1x32x384xf32, #tpu.memory_space<vmem>>, vector<1x32x384xf32>
    %2 = vector.shape_cast %1 : vector<1x32x384xf32> to vector<32x384xf32>
    %c0_2 = arith.constant 0 : index
    %c0_3 = arith.constant 0 : index
    %c0_4 = arith.constant 0 : index
    %3 = vector.load %arg6[%c0_2, %c0_3, %c0_4] : memref<1x32x1xf32, #tpu.memory_space<vmem>>, vector<1x32x1xf32>
    %4 = vector.shape_cast %3 : vector<1x32x1xf32> to vector<32x1xf32>
    %5 = tpu.iota {dimensions = array<i32: 1>} : vector<1x384xi32>
    %6 = vector.broadcast %0 : i32 to vector<1x384xi32>
    %7 = arith.addi %6, %5 : vector<1x384xi32>
    %c384_i32_5 = arith.constant 384 : i32
    %8 = vector.broadcast %c384_i32_5 : i32 to vector<1x384xi32>
    %9 = arith.cmpi slt, %7, %8 : vector<1x384xi32>
    %10 = vector.broadcast %4 : vector<32x1xf32> to vector<32x384xf32>
    %11 = arith.addf %2, %10 : vector<32x384xf32>
    %cst = arith.constant 0.000000e+00 : f32
    %12 = vector.shape_cast %9 : vector<1x384xi1> to vector<1x384xi1>
    %13 = vector.broadcast %12 : vector<1x384xi1> to vector<32x384xi1>
    %14 = vector.broadcast %cst : f32 to vector<32x384xf32>
    %15 = arith.select %13, %11, %14 : vector<32x384xi1>, vector<32x384xf32>
    %16 = tpu.iota {dimensions = array<i32: 1>} : vector<1x1xi32>
    %c384_i32_6 = arith.constant 384 : i32
    %17 = arith.addi %0, %c384_i32_6 : i32
    %18 = vector.broadcast %17 : i32 to vector<1x1xi32>
    %19 = arith.addi %18, %16 : vector<1x1xi32>
    %c384_i32_7 = arith.constant 384 : i32
    %20 = vector.broadcast %c384_i32_7 : i32 to vector<1x1xi32>
    %21 = arith.cmpi slt, %19, %20 : vector<1x1xi32>
    %c0_8 = arith.constant 0 : index
    %c0_9 = arith.constant 0 : index
    %c0_10 = arith.constant 0 : index
    %22 = vector.load %arg4[%c0_8, %c0_9, %c0_10] : memref<1x32x128xf32, #tpu.memory_space<vmem>>, vector<1x32x1xf32>
    %23 = vector.shape_cast %22 : vector<1x32x1xf32> to vector<32x1xf32>
    %24 = arith.addf %23, %4 : vector<32x1xf32>
    %cst_11 = arith.constant 0.000000e+00 : f32
    %25 = vector.shape_cast %21 : vector<1x1xi1> to vector<1x1xi1>
    %26 = vector.broadcast %25 : vector<1x1xi1> to vector<32x1xi1>
    %27 = vector.broadcast %cst_11 : f32 to vector<32x1xf32>
    %28 = arith.select %26, %24, %27 : vector<32x1xi1>, vector<32x1xf32>
    %c1_i32 = arith.constant 1 : i32
    %29 = arith.subi %0, %c1_i32 : i32
    %30 = vector.broadcast %29 : i32 to vector<1x1xi32>
    %31 = arith.addi %30, %16 : vector<1x1xi32>
    %c0_i32 = arith.constant 0 : i32
    %32 = vector.broadcast %c0_i32 : i32 to vector<1x1xi32>
    %33 = arith.cmpi sge, %31, %32 : vector<1x1xi32>
    %c0_12 = arith.constant 0 : index
    %c0_13 = arith.constant 0 : index
    %c127 = arith.constant 127 : index
    %34 = vector.load %arg3[%c0_12, %c0_13, %c127] : memref<1x32x128xf32, #tpu.memory_space<vmem>>, vector<1x32x1xf32>
    %35 = vector.shape_cast %34 : vector<1x32x1xf32> to vector<32x1xf32>
    %36 = arith.addf %35, %4 : vector<32x1xf32>
    %cst_14 = arith.constant 0.000000e+00 : f32
    %37 = vector.shape_cast %33 : vector<1x1xi1> to vector<1x1xi1>
    %38 = vector.broadcast %37 : vector<1x1xi1> to vector<32x1xi1>
    %39 = vector.broadcast %cst_14 : f32 to vector<32x1xf32>
    %40 = arith.select %38, %36, %39 : vector<32x1xi1>, vector<32x1xf32>
    %c0_15 = arith.constant 0 : index
    %c0_16 = arith.constant 0 : index
    %41 = vector.load %arg13[%c0_15, %c0_16] : memref<112x384xf32, #tpu.memory_space<vmem>>, vector<32x1xf32>
    tpu.vector_store %arg13[%c0_15, %c0_16], %40 {strides = array<i32>} : memref<112x384xf32, #tpu.memory_space<vmem>>, vector<32x1xf32>,
    %42 = vector.extract_strided_slice %15 {offsets = [0, 0], sizes = [32, 383], strides = [1, 1]} : vector<32x384xf32> to vector<32x383xf32>
    %c0_17 = arith.constant 0 : index
    %c1 = arith.constant 1 : index
    %43 = vector.load %arg13[%c0_17, %c1] : memref<112x384xf32, #tpu.memory_space<vmem>>, vector<32x383xf32>
    tpu.vector_store %arg13[%c0_17, %c1], %42 {strides = array<i32>} : memref<112x384xf32, #tpu.memory_space<vmem>>, vector<32x383xf32>,
    %c32 = arith.constant 32 : index
    %c0_18 = arith.constant 0 : index
    %44 = vector.load %arg13[%c32, %c0_18] : memref<112x384xf32, #tpu.memory_space<vmem>>, vector<32x384xf32>
    tpu.vector_store %arg13[%c32, %c0_18], %15 {strides = array<i32>} : memref<112x384xf32, #tpu.memory_space<vmem>>, vector<32x384xf32>,
    %45 = vector.extract_strided_slice %15 {offsets = [0, 1], sizes = [32, 383], strides = [1, 1]} : vector<32x384xf32> to vector<32x383xf32>
    %c64 = arith.constant 64 : index
    %c0_19 = arith.constant 0 : index
    %46 = vector.load %arg13[%c64, %c0_19] : memref<112x384xf32, #tpu.memory_space<vmem>>, vector<32x383xf32>
    tpu.vector_store %arg13[%c64, %c0_19], %45 {strides = array<i32>} : memref<112x384xf32, #tpu.memory_space<vmem>>, vector<32x383xf32>,
    %c64_20 = arith.constant 64 : index
    %c383 = arith.constant 383 : index
    %47 = vector.load %arg13[%c64_20, %c383] : memref<112x384xf32, #tpu.memory_space<vmem>>, vector<32x1xf32>
    tpu.vector_store %arg13[%c64_20, %c383], %28 {strides = array<i32>} : memref<112x384xf32, #tpu.memory_space<vmem>>, vector<32x1xf32>,
    %c0_21 = arith.constant 0 : index
    %c0_22 = arith.constant 0 : index
    %c0_23 = arith.constant 0 : index
    %48 = vector.load %arg5[%c0_21, %c0_22, %c0_23] : memref<1x16x384xf32, #tpu.memory_space<vmem>>, vector<1x16x384xf32>
    %49 = vector.shape_cast %48 : vector<1x16x384xf32> to vector<16x384xf32>
    %c96 = arith.constant 96 : index
    %c0_24 = arith.constant 0 : index
    %50 = vector.load %arg13[%c96, %c0_24] : memref<112x384xf32, #tpu.memory_space<vmem>>, vector<16x384xf32>
    tpu.vector_store %arg13[%c96, %c0_24], %49 {strides = array<i32>} : memref<112x384xf32, #tpu.memory_space<vmem>>, vector<16x384xf32>,
    %c0_25 = arith.constant 0 : index
    %c0_26 = arith.constant 0 : index
    %51 = vector.load %arg7[%c0_25, %c0_26] : memref<64x112xf32, #tpu.memory_space<vmem>>, vector<64x112xf32>
    %c0_27 = arith.constant 0 : index
    %c0_28 = arith.constant 0 : index
    %52 = vector.load %arg13[%c0_27, %c0_28] : memref<112x384xf32, #tpu.memory_space<vmem>>, vector<112x384xf32>
    %cst_29 = arith.constant dense<0.000000e+00> : vector<64x384xf32>
    %53 = tpu.matmul %51, %52, %cst_29 {dimension_numbers = #tpu.dot_dimension_numbers<[1], [0], [0], [1], [0, 0, 1, 1], [], []>} : vector<64x112xf32>, vector<112x384xf32>, vector<64x384xf32> -> vector<64x384xf32>
    %c0_30 = arith.constant 0 : index
    %c0_31 = arith.constant 0 : index
    %54 = vector.load %arg9[%c0_30, %c0_31] : memref<64x1xf32, #tpu.memory_space<vmem>>, vector<64x1xf32>
    %55 = vector.broadcast %54 : vector<64x1xf32> to vector<64x384xf32>
    %56 = arith.addf %53, %55 : vector<64x384xf32>
    %57 = vector.extract_strided_slice %56 {offsets = [0, 0], sizes = [32, 384], strides = [1, 1]} : vector<64x384xf32> to vector<32x384xf32>
    %cst_32 = arith.constant 5.000000e-01 : f32
    %58 = vector.broadcast %cst_32 : f32 to vector<32x384xf32>
    %59 = arith.mulf %58, %57 : vector<32x384xf32>
    %60 = math.tanh %59 : vector<32x384xf32>
    %cst_33 = arith.constant 1.000000e+00 : f32
    %61 = vector.broadcast %cst_33 : f32 to vector<32x384xf32>
    %62 = arith.addf %60, %61 : vector<32x384xf32>
    %cst_34 = arith.constant 5.000000e-01 : f32
    %63 = vector.broadcast %cst_34 : f32 to vector<32x384xf32>
    %64 = arith.mulf %63, %62 : vector<32x384xf32>
    %65 = vector.extract_strided_slice %56 {offsets = [32, 0], sizes = [32, 384], strides = [1, 1]} : vector<64x384xf32> to vector<32x384xf32>
    %66 = math.tanh %65 : vector<32x384xf32>
    %67 = arith.mulf %64, %66 : vector<32x384xf32>
    %c0_35 = arith.constant 0 : index
    %c0_36 = arith.constant 0 : index
    %68 = vector.load %arg8[%c0_35, %c0_36] : memref<64x32xf32, #tpu.memory_space<vmem>>, vector<64x32xf32>
    %cst_37 = arith.constant dense<0.000000e+00> : vector<64x384xf32>
    %69 = tpu.matmul %68, %67, %cst_37 {dimension_numbers = #tpu.dot_dimension_numbers<[1], [0], [0], [1], [0, 0, 1, 1], [], []>} : vector<64x32xf32>, vector<32x384xf32>, vector<64x384xf32> -> vector<64x384xf32>
    %c0_38 = arith.constant 0 : index
    %c0_39 = arith.constant 0 : index
    %70 = vector.load %arg10[%c0_38, %c0_39] : memref<64x1xf32, #tpu.memory_space<vmem>>, vector<64x1xf32>
    %71 = vector.broadcast %70 : vector<64x1xf32> to vector<64x384xf32>
    %72 = arith.addf %69, %71 : vector<64x384xf32>
    %73 = vector.extract_strided_slice %72 {offsets = [0, 0], sizes = [32, 384], strides = [1, 1]} : vector<64x384xf32> to vector<32x384xf32>
    %74 = arith.addf %2, %73 : vector<32x384xf32>
    %cst_40 = arith.constant 0.707106769 : f32
    %75 = vector.broadcast %cst_40 : f32 to vector<32x384xf32>
    %76 = arith.mulf %74, %75 : vector<32x384xf32>
    %c0_41 = arith.constant 0 : index
    %c0_42 = arith.constant 0 : index
    %c0_43 = arith.constant 0 : index
    %77 = vector.load %arg11[%c0_41, %c0_42, %c0_43] : memref<1x32x384xf32, #tpu.memory_space<vmem>>, vector<1x32x384xf32>
    %78 = vector.shape_cast %77 : vector<1x32x384xf32> to vector<32x384xf32>
    %79 = vector.shape_cast %76 : vector<32x384xf32> to vector<1x32x384xf32>
    tpu.vector_store %arg11[%c0_41, %c0_42, %c0_43], %79 {strides = array<i32>} : memref<1x32x384xf32, #tpu.memory_space<vmem>>, vector<1x32x384xf32>,
    %80 = vector.extract_strided_slice %72 {offsets = [32, 0], sizes = [32, 384], strides = [1, 1]} : vector<64x384xf32> to vector<32x384xf32>
    %c0_44 = arith.constant 0 : index
    %c0_45 = arith.constant 0 : index
    %c0_46 = arith.constant 0 : index
    %81 = vector.load %arg12[%c0_44, %c0_45, %c0_46] : memref<1x32x384xf32, #tpu.memory_space<vmem>>, vector<1x32x384xf32>
    %82 = vector.shape_cast %81 : vector<1x32x384xf32> to vector<32x384xf32>
    %83 = vector.shape_cast %80 : vector<32x384xf32> to vector<1x32x384xf32>
    tpu.vector_store %arg12[%c0_44, %c0_45, %c0_46], %83 {strides = array<i32>} : memref<1x32x384xf32, #tpu.memory_space<vmem>>, vector<1x32x384xf32>,
    return
  }
  func.func @transform_0(%arg0: i32, %arg1: i32) -> (i32, i32, i32) {
    %c0_i32 = arith.constant 0 : i32
    %c0_i32_0 = arith.constant 0 : i32
    return %arg0, %c0_i32, %arg1 : i32, i32, i32
  }
  func.func @transform_1(%arg0: i32, %arg1: i32) -> (i32, i32, i32) {
    %c3_i32 = arith.constant 3 : i32
    %0 = arith.muli %arg1, %c3_i32 : i32
    %c1_i32 = arith.constant 1 : i32
    %1 = arith.subi %0, %c1_i32 : i32
    %c0_i32 = arith.constant 0 : i32
    %2 = arith.maxsi %1, %c0_i32 : i32
    %c0_i32_0 = arith.constant 0 : i32
    %c0_i32_1 = arith.constant 0 : i32
    return %arg0, %c0_i32_0, %2 : i32, i32, i32
  }
  func.func @transform_2(%arg0: i32, %arg1: i32) -> (i32, i32, i32) {
    %c1_i32 = arith.constant 1 : i32
    %0 = arith.addi %arg1, %c1_i32 : i32
    %c3_i32 = arith.constant 3 : i32
    %1 = arith.muli %0, %c3_i32 : i32
    %c2_i32 = arith.constant 2 : i32
    %2 = arith.minsi %1, %c2_i32 : i32
    %c0_i32 = arith.constant 0 : i32
    %c0_i32_0 = arith.constant 0 : i32
    return %arg0, %c0_i32, %2 : i32, i32, i32
  }
  func.func @transform_3(%arg0: i32, %arg1: i32) -> (i32, i32, i32) {
    %c0_i32 = arith.constant 0 : i32
    %c0_i32_0 = arith.constant 0 : i32
    return %arg0, %c0_i32, %arg1 : i32, i32, i32
  }
  func.func @transform_4(%arg0: i32, %arg1: i32) -> (i32, i32, i32) {
    %c0_i32 = arith.constant 0 : i32
    %c0_i32_0 = arith.constant 0 : i32
    %c0_i32_1 = arith.constant 0 : i32
    return %arg0, %c0_i32, %c0_i32_0 : i32, i32, i32
  }
  func.func @transform_5(%arg0: i32, %arg1: i32) -> (i32, i32) {
    %c0_i32 = arith.constant 0 : i32
    %c0_i32_0 = arith.constant 0 : i32
    %c0_i32_1 = arith.constant 0 : i32
    return %c0_i32, %c0_i32_0 : i32, i32
  }
  func.func @transform_6(%arg0: i32, %arg1: i32) -> (i32, i32) {
    %c0_i32 = arith.constant 0 : i32
    %c0_i32_0 = arith.constant 0 : i32
    %c0_i32_1 = arith.constant 0 : i32
    return %c0_i32, %c0_i32_0 : i32, i32
  }
  func.func @transform_7(%arg0: i32, %arg1: i32) -> (i32, i32) {
    %c0_i32 = arith.constant 0 : i32
    %c0_i32_0 = arith.constant 0 : i32
    %c0_i32_1 = arith.constant 0 : i32
    return %c0_i32, %c0_i32_0 : i32, i32
  }
  func.func @transform_8(%arg0: i32, %arg1: i32) -> (i32, i32) {
    %c0_i32 = arith.constant 0 : i32
    %c0_i32_0 = arith.constant 0 : i32
    %c0_i32_1 = arith.constant 0 : i32
    return %c0_i32, %c0_i32_0 : i32, i32
  }
  func.func @transform_9(%arg0: i32, %arg1: i32) -> (i32, i32, i32) {
    %c0_i32 = arith.constant 0 : i32
    %c0_i32_0 = arith.constant 0 : i32
    return %arg0, %c0_i32, %arg1 : i32, i32, i32
  }
  func.func @transform_10(%arg0: i32, %arg1: i32) -> (i32, i32, i32) {
    %c0_i32 = arith.constant 0 : i32
    %c0_i32_0 = arith.constant 0 : i32
    return %arg0, %c0_i32, %arg1 : i32, i32, i32
  }
}

</mosaic_0001>

<bundles_post_ra>
// kernel: tpu_custom_call.1
= control target key start
LH: loop header
LB: loop body
LE: loop exit
PB: predicated region body
PF: predicated region fallthrough
CT: control target
= control target key end

     0   :  { %s3318_s0 = inlined_call_operand.vmem [shape: f32[2,32,384], index: 0, kind: input, shape index: {}]   ;;  %s3319_s1 = inlined_call_operand.hbm [shape: f32[2,32,384], index: 1, kind: input, shape index: {}]   ;;  %s3320_s2 = inlined_call_operand.hbm [shape: f32[2,32,384], index: 2, kind: input, shape index: {}]   ;;  %s3321_s3 = inlined_call_operand.vmem [shape: f32[2,16,384], index: 3, kind: input, shape index: {}]   ;;  %s3322_s4 = inlined_call_operand.vmem [shape: f32[2,32,1], index: 4, kind: input, shape index: {}]   ;;  %s3323_s5 = inlined_call_operand.hbm [shape: f32[64,112], index: 5, kind: input, shape index: {}]   ;;  %s3324_s6 = inlined_call_operand.vmem [shape: f32[64,32], index: 6, kind: input, shape index: {}]   ;;  %s3325_s7 = inlined_call_operand.vmem [shape: f32[64,1], index: 7, kind: input, shape index: {}]   ;;  %s3326_s8 = inlined_call_operand.vmem [shape: f32[64,1], index: 8, kind: input, shape index: {}]   ;;  %s3327_s9 = inlined_call_operand.hbm [shape: f32[2,32,384], index: 9, kind: output, shape index: {0}]   ;;  %s3328_s10 = inlined_call_operand.hbm [shape: f32[2,32,384], index: 10, kind: output, shape index: {1}]  }
   0x1   :  { %3344 = sst [smem:[#allocation22_spill]] %s3319_s1 }
   0x2   :  { %3345 = sst [smem:[#allocation23_spill]] %s3323_s5 }
   0x3   :  { %3346 = sst [smem:[#allocation24_spill]] %s3324_s6 }
   0x4   :  { %3347 = sst [smem:[#allocation25_spill]] %s3326_s8 }
   0x5   :  { %3348 = sst [smem:[#allocation26_spill]] %s3327_s9 }
   0x6   :  { %3349 = sst [smem:[#allocation27_spill]] %s3328_s10 }
   0x7   :  { %16 = vsyncpa [#allocation4], 0 }
   0x8   :  { %18 = vsyncpa [#allocation4 + $0x1], 0 }
   0x9   :  { %19 = vsyncpa [#allocation7], 0 }
   0xa   :  { %21 = vsyncpa [#allocation7 + $0x1], 0 }
   0xb   :  { %22 = vsyncpa [#allocation5], 0 }
   0xc   :  { %24 = vsyncpa [#allocation5 + $0x1], 0 }
   0xd   :  { %25 = vsyncpa [#allocation11], 0 }
   0xe   :  { %27 = vsyncpa [#allocation11 + $0x1], 0  ;;  %s2582_s13 = smov 0   ;;  %s2584_s14 = smov 0  }
   0xf   :  { %s2586_s15 = smov 0   ;;  %s2588_s16 = smov 0  }
  0x10   :  { %s2590_s17 = smov 0   ;;  %s2592_s18 = smov 0  }
  0x11 LB: > { %3350 = sst [smem:[#allocation17_spill]] %s2491_s13  ;;  %s2613_s19 = sadd.s32 4294967295, %s2511_s18   ;;  %s2511_s18 = sphi %s2592_s18, %s33_s18   ;;  %s2507_s17 = sphi %s2590_s17, %s3389_s17   ;;  %s2503_s16 = sphi %s2588_s16, %s3388_s16   ;;  %s2499_s15 = sphi %s2586_s15, %s3387_s15   ;;  %s2495_s14 = sphi %s2584_s14, %s3386_s14   ;;  %s2491_s13 = sphi %s2582_s13, %s3385_s13  }
  0x12   : > { %s1912_s20 = sadd.s32 4294967294, %s2511_s18   ;;  %p97_p0 = scmp.ne.s32.totalorder %s2499_s15, %s2495_s14 }
  0x13   : > { %p98_p1 = scmp.eq.s32.totalorder %s2511_s18, 0  ;;  %p103_p2 = scmp.ne.s32.totalorder %s2495_s14, %s2491_s13 }
  0x14   : > { %p3334_p3 = scmp.eq.s32.totalorder %s2613_s19, 0  ;;  %p303_p4 = scmp.eq.s32.totalorder %s2613_s19, 1 }
  0x15   : > { %p2624_p5 = por %p98_p1, %p97_p0  ;;  %p309_p6 = scmp.eq.s32.totalorder %s1912_s20, 1 }
  0x16   : > { %p2630_p7 = por %p3334_p3, %p103_p2  ;;  %p2634_p8 = por %p303_p4, %p97_p0 }
  0x17   : > { %p2638_p9 = por %p309_p6, %p103_p2  ;;  %p1913_p10 = scmp.ge.s32.totalorder %s2511_s18, 1 }
  0x18   : > { %s3352_s23 = scalar_select %p2630_p7, 1, 0 }
  0x19   : > { %s3353_s24 = scalar_select %p2634_p8, 1, 0 }
  0x1a   : > { %s3355_s25 = scalar_select %p2638_p9, 1, 0 }
  0x1b   : > { %3354 = sst [smem:[#allocation18_spill]] %s3353_s24  ;;  %p344_p11 = scmp.lt.s32.totalorder %s2511_s18, 3 }
  0x1c   : > { %3356 = sst [smem:[#allocation19_spill]] %s3355_s25  ;;  %s2513_s27 = smov [#allocation8]  }
  0x1d   : > { %p2644_p12 = pnand %p1913_p10, %p344_p11  ;;  %s356_s28 = sshll.u32 %s2513_s27, 4  ;;  %s2648_s28 = int_to_ptr.vmem [resolvable:$true] %s356_s28 }
  0x1e   : > { %p2171_p1 = scmp.lt.s32.totalorder %s2511_s18, 2  ;;  %s45_s11 = sadd.s32 1, %s2507_s17 }
  0x1f   : > { %s3357_s26 = scalar_select %p2644_p12, 1, 0 }
  0x20   : > { %p2152_p13 = pneg %p2644_p12  ;;  %p2662_p4 = pnand %p2171_p1, %p2624_p5 }
  0x21   : > { %p2667_p6 = scmp.ge.s32.totalorder %s45_s11, 2  ;;  %s3361_s5 = sld [smem:[#allocation23_spill]] }
  0x22   : > { %p2656_p2 = pnand %p2152_p13, %p3334_p3 }
  0x23   : > { %s3359_s30 = scalar_select %p2662_p4, 1, 0 }
  0x24   : > { %s3360_s12 = scalar_select %p2667_p6, 1, 0 }
  0x25   : > { %p2303_p11 = pneg %p2656_p2 }
  0x27   : > { %s2301_s21 = scalar_lea.hbm %s3361_s5, 1024 }
  0x28   : > { %p2302_p10 = scmp.ne.s32.totalorder %s3361_s5, %s2301_s21  ;;  %p2308_p1 = scmp.lt.u32.totalorder %s2301_s21, %s3361_s5 }
  0x2a   : > { %p2304_p13 = pnand %p2303_p11, %p2302_p10 }
  0x2c   : > { %p2305_p5 = pneg %p2304_p13 }
  0x2e   : > { %p2310_p0 = pnand %p2308_p1, %p2305_p5 }
  0x30   : > { %2313 = shalt.err (!%p2310_p0)
}
  0x31   : > { %s2314_s24 = scalar_lea.vmem %s2648_s28, 1024  ;;  %p2322_p7 = scmp.lt.s32.totalorder %s2648_s28, %s2648_s28 }
  0x32   : > { %p2315_p3 = scmp.ne.s32.totalorder %s2648_s28, %s2314_s24  ;;  %p2323_p12 = scmp.lt.s32.totalorder %s2314_s24, %s2314_s24 }
  0x34   : > { %p2317_p9 = pnand %p2315_p3, %p2303_p11  ;;  %p2324_p4 = por %p2323_p12, %p2322_p7 }
  0x36   : > { %p2318_p8 = pneg %p2317_p9 }
  0x38   : > { %p2325_p6 = pnand %p2324_p4, %p2318_p8 }
  0x3a   : > { %2328 = shalt.err (!%p2325_p6)
}
  0x3b   : > { %s2514_s13 = smov 128   ;;  %s2515_s10 = smov 8  }
  0x3c   : > { %2155 = dma.hbm_to_vmem [thread:$0]  (!%p2656_p2), %s3361_s5, 1024, %s2648_s28, [#allocation7], %s2514_s13, %s2514_s13, %s2515_s10  }
  0x3d   : > { %s392_s25 = sand.u32 1, %s2499_s15   ;;  %p3362_p3 = scmp.ne.s32.totalorder %s3360_s12, 0 }
  0x3e   : > { %s2700_s20 = sshll.u32 %s392_s25, 5  ;;  %s3342_s29 = smul.u32 1536, %s2507_s17 }
  0x3f   : > { %s3391_s11 = smov (%p3362_p3, %s45_s11), 0  ;;  %s396_s22 = scalar_lea.vmem [#allocation3], %s2700_s20 }
  0x40   : > { %3363 = sst [smem:[#allocation20_spill]] %s3391_s11  ;;  %s85_s27 = ssub.s32 %s2507_s17, %s3391_s11 }
  0x41   : > { %p88_p7 = scmp.eq.s32.totalorder %s85_s27, 0  ;;  %s408_s9 = sshll.u32 %s396_s22, 4  ;;  %s2718_s9 = int_to_ptr.vmem [resolvable:$true] %s408_s9 }
  0x42   : > { %s3364_s6 = sadd.s32 1, %s2499_s15  ;;  %s3366_s1 = sld [smem:[#allocation22_spill]] }
  0x43   : > { %s2709_s8 = scalar_select %p88_p7, %s2499_s15, %s3364_s6  }
  0x44   : > { %s2720_s12 = scalar_lea.sflag [#allocation4], %s392_s25  ;;  %p3367_p9 = scmp.ne.s32.totalorder %s3359_s30, 0 }
  0x45   : > { %3365 = sst [smem:[#allocation21_spill]] %s2709_s8 }
  0x46   : > { %p2331_p12 = pneg %p3367_p9 }
  0x48   : > { %s2716_s24 = scalar_lea.hbm %s3366_s1, %s3342_s29  ;;  %s2334_s21 = scalar_lea.hbm %s3366_s1, 3072 }
  0x49   : > { %s2329_s27 = scalar_lea.hbm %s2716_s24, 512  ;;  %p2335_p4 = scmp.lt.u32.totalorder %s2716_s24, %s3366_s1 }
  0x4a   : > { %p2330_p8 = scmp.ne.s32.totalorder %s2716_s24, %s2329_s27  ;;  %p2336_p6 = scmp.lt.u32.totalorder %s2334_s21, %s2329_s27 }
  0x4b   : > { %p2338_p11 = scmp.lt.u32.totalorder %s2329_s27, %s2716_s24 }
  0x4c   : > { %p2332_p0 = pnand %p2331_p12, %p2330_p8  ;;  %p2337_p10 = por %p2336_p6, %p2335_p4 }
  0x4e   : > { %p2333_p2 = pneg %p2332_p0  ;;  %p2339_p13 = por %p2338_p11, %p2337_p10 }
  0x50   : > { %p2340_p5 = pnand %p2339_p13, %p2333_p2 }
  0x52   : > { %2343 = shalt.err (!%p2340_p5)
}
  0x53   : > { %s2344_s25 = scalar_lea.vmem %s2718_s9, 512  ;;  %s2516_s6 = smov [#allocation3]  }
  0x54   : > { %p2345_p1 = scmp.ne.s32.totalorder %s2718_s9, %s2344_s25  ;;  %s2349_s22 = sshll.u32 %s2516_s6, 4  ;;  %s2350_s22 = int_to_ptr.vmem [resolvable:$false] %s2349_s22 }
  0x55   : > { %s2351_s29 = scalar_lea.vmem %s2350_s22, 1024  ;;  %p2352_p8 = scmp.lt.s32.totalorder %s2718_s9, %s2350_s22 }
  0x56   : > { %p2347_p3 = pnand %p2345_p1, %p2331_p12  ;;  %p2353_p0 = scmp.lt.s32.totalorder %s2351_s29, %s2344_s25 }
  0x58   : > { %p2348_p7 = pneg %p2347_p3  ;;  %p2354_p4 = por %p2353_p0, %p2352_p8 }
  0x5a   : > { %p2355_p6 = pnand %p2354_p4, %p2348_p7 }
  0x5c   : > { %2358 = shalt.err (!%p2355_p6)
}
  0x5d   : > { %s2517_s27 = smov 384   ;;  %s422_s21 = scalar_lea.vmem [#allocation6], %s2700_s20 }
  0x5e   : > { %2159 = dma.hbm_to_vmem [thread:$0]  (!%p3367_p9), %s2716_s24, 512, %s2718_s9, %s2720_s12, %s2517_s27, %s2514_s13, %s2515_s10  }
  0x5f   : > { %s434_s28 = sshll.u32 %s422_s21, 4  ;;  %s418_s25 = sand.u32 1, %s2511_s18   ;;  %s2753_s28 = int_to_ptr.vmem [resolvable:$true] %s434_s28 }
  0x60   : > { %s3368_s6 = smul.u32 1536, %s2507_s17  ;;  %s2762_s11 = scalar_lea.sflag [#allocation7], %s418_s25 }
  0x61   : > { %s2364_s24 = scalar_lea.hbm %s3320_s2, 3072 }
  0x62   : > { %s1965_s22 = sadd.s32 256, %s3368_s6 }
  0x63   : > { %s2760_s5 = scalar_lea.hbm %s3320_s2, %s1965_s22 }
  0x64   : > { %s2359_s8 = scalar_lea.hbm %s2760_s5, 512  ;;  %p2365_p13 = scmp.lt.u32.totalorder %s2760_s5, %s3320_s2 }
  0x65   : > { %p2360_p2 = scmp.ne.s32.totalorder %s2760_s5, %s2359_s8  ;;  %p2366_p5 = scmp.lt.u32.totalorder %s2364_s24, %s2359_s8 }
  0x66   : > { %p2368_p3 = scmp.lt.u32.totalorder %s2359_s8, %s2760_s5 }
  0x67   : > { %p2362_p10 = pnand %p2360_p2, %p2331_p12  ;;  %p2367_p1 = por %p2366_p5, %p2365_p13 }
  0x69   : > { %p2363_p11 = pneg %p2362_p10  ;;  %p2369_p7 = por %p2368_p3, %p2367_p1 }
  0x6b   : > { %p2370_p8 = pnand %p2369_p7, %p2363_p11 }
  0x6d   : > { %2373 = shalt.err (!%p2370_p8)
}
  0x6e   : > { %s2374_s21 = scalar_lea.vmem %s2753_s28, 512  ;;  %s2518_s25 = smov [#allocation6]  }
  0x6f   : > { %p2375_p0 = scmp.ne.s32.totalorder %s2753_s28, %s2374_s21  ;;  %s2379_s6 = sshll.u32 %s2518_s25, 4  ;;  %s2380_s6 = int_to_ptr.vmem [resolvable:$false] %s2379_s6 }
  0x70   : > { %s2381_s22 = scalar_lea.vmem %s2380_s6, 1024  ;;  %p2382_p2 = scmp.lt.s32.totalorder %s2753_s28, %s2380_s6 }
  0x71   : > { %p2377_p4 = pnand %p2375_p0, %p2331_p12  ;;  %p2383_p10 = scmp.lt.s32.totalorder %s2381_s22, %s2374_s21 }
  0x73   : > { %p2378_p6 = pneg %p2377_p4  ;;  %p2384_p13 = por %p2383_p10, %p2382_p2 }
  0x75   : > { %p2385_p5 = pnand %p2384_p13, %p2378_p6 }
  0x77   : > { %2388 = shalt.err (!%p2385_p5)
}
  0x78   : > { %2162 = dma.hbm_to_vmem [thread:$0]  (!%p3367_p9), %s2760_s5, 512, %s2753_s28, %s2762_s11, %s2517_s27, %s2514_s13, %s2515_s10  }
  0x79   : > { %p3369_p12 = scmp.ne.s32.totalorder %s3357_s26, 0 }
  0x7a   : > { %s2794_s8 = sand.u32 (!%p3369_p12), 1, %s2495_s14   ;;  %p3370_p11 = scmp.ne.s32.totalorder (!%p3369_p12), %s3352_s23, 0 }
  0x7b   : > { %467 = sbr.rel (%p3369_p12) target bundleno = 987 (0x3db), region = 56  ;;  %s1921_s29 = sshll.u32 (!%p3369_p12), %s2794_s8, 5 }
  0x7c   : > { %s470_s9 = scalar_lea.sflag (!%p3369_p12), [#allocation4], %s2794_s8  ;;  %s2798_s20 = scalar_lea.vmem (!%p3369_p12), [#allocation3], %s1921_s29 }
  0x82   : > { %2470 = dma.done.wait (%p3370_p11), %s470_s9, 512  }
  0x83   : > { %2472 = vsyncadd (%p3370_p11), %s470_s9, 4294966784  ;;  %s478_s5 = sand.u32 1, %s2613_s19  }
  0x84   : > { %s479_s26 = scalar_lea.sflag [#allocation7], %s478_s5 }
  0x85   : > { %2474 = dma.done.wait (%p3370_p11), %s479_s26, 512  }
  0x86   : > { %2476 = vsyncadd (%p3370_p11), %s479_s26, 4294966784  ;;  %p3371_p9 = scmp.eq.s32.totalorder %s2613_s19, 0 }
  0x88   : > { %2478 = dma.done.wait (%p3371_p9), [#allocation7], 1024   ;;  %p3372_p1 = pmov %p3371_p9 }
  0x89   : > { %p557_p3 = scmp.lt.s32.totalorder %s2503_s16, 1  ;;  %v2519_v0 = vmov 0   ;;  %s2520_s19 = smov 127   ;;  %v2521_v11 = vmov 0.0   ;;  %v692_v40 = vld [vmem:[%s2798_s20 + $0x8] sm:$0xff]  ;;  %v691_v41 = vld [vmem:[%s2798_s20] sm:$0xff] }
  0x8a   : > { %2480 = vsyncadd (%p3372_p1), [#allocation7], 4294966272  ;;  %2234 = vset.pattern.permute.xlu1 %v2519_v0  ;;  %2233 = vset.pattern.permute.xlu0 %v2519_v0  ;;  %v694_v52 = vld [vmem:[%s2798_s20 + $0x18] sm:$0xff]  ;;  %v693_v53 = vld [vmem:[%s2798_s20 + $0x10] sm:$0xff]  ;;  %s2522_s22 = smov 1   ;;  %vm1007_vm0 = vcmask 916480  }
  0x8b   : > { %s558_s30 = scalar_select %p557_p3, %s2503_s16, 1  ;;  %1096 = vmatprep.mubr.f32.mxu0 %v2521_v11  ;;  %v2939_v58 = vld [vmem:[#allocation8] sm:$0xff]  ;;  %v960_v59 = vld [vmem:[%s3325_s7 + $0x8] sm:$0xff]  ;;  %v959_v60 = vld [vmem:[%s3325_s7] sm:$0xff]  ;;  %vm733_vm2 = vcmask 7168   ;;  %vm794_vm3 = vcmask 1047560  }
  0x8c   : > { %2029 = vmatprep.mubr.msk.f32.mxu1 %vm1007_vm0, %v2939_v58  ;;  %v962_v61 = vld [vmem:[%s3325_s7 + $0x18] sm:$0xff]  ;;  %v961_v62 = vld [vmem:[%s3325_s7 + $0x10] sm:$0xff]  ;;  %v964_v63 = vld [vmem:[%s3325_s7 + $0x28] sm:$0xff]  ;;  %vm843_vm4 = vcmask 1039360   ;;  %vm892_vm5 = vcmask 1048568   ;;  %s3374_s21 = sld [smem:[#allocation24_spill]] }
  0x8d   : > { %s1966_s11 = sshll.u32 %s558_s30, 5  ;;  %s2137_s13 = smul.u32 48, %s558_s30  ;;  %v963_v0 = vld [vmem:[%s3325_s7 + $0x20] sm:$0xff]  ;;  %vm1378_vm6 = vcmask 261120  }
  0x8e   : > { %s588_s23 = scalar_lea.vmem %s3322_s4, %s1966_s11  ;;  %s2136_s1 = smul.u32 96, %s558_s30 }
  0x8f   : > { %s582_s12 = scalar_lea.vmem %s3321_s3, %s2137_s13  ;;  %v606_v1 = vld [vmem:[%s588_s23 + $0x10] sm:$0xff]  ;;  %v604_v2 = vld [vmem:[%s588_s23] sm:$0xff]  ;;  %v607_v3 = vld [vmem:[%s588_s23 + $0x18] sm:$0xff]  ;;  %s3375_s20 = sld [smem:[#allocation26_spill]] }
  0x90   : > { %v2821_v4 = vld [vmem:[%s582_s12] sm:$0xff]  ;;  %v2823_v5 = vld [vmem:[%s582_s12 + $0x8] sm:$0xff]  ;;  %v2825_v6 = vld [vmem:[%s582_s12 + $0x10] sm:$0xff]  ;;  %631 = vperm.xlu1 %2234, %v606_v1   ;;  %621 = vperm.xlu0 %2233, %v604_v2   ;;  %s2841_s6 = scalar_lea.vmem %s3318_s0, %s2136_s1  ;;  %s2138_s1 = smul.u32 1536, %s2503_s16 }
  0x91   : > { %v2827_v7 = vld [vmem:[%s582_s12 + $0x18] sm:$0xff]  ;;  %v2829_v8 = vld [vmem:[%s582_s12 + $0x20] sm:$0xff]  ;;  %v2831_v9 = vld [vmem:[%s582_s12 + $0x28] sm:$0xff]  ;;  %s2135_s12 = smul.u32 96, %s2794_s8  ;;  %s3376_s26 = sld [smem:[#allocation18_spill]] }
  0x92   : > { %v605_v10 = vld [vmem:[%s588_s23 + $0x8] sm:$0xff]  ;;  %v598_v12 = vld [vmem:[%s2841_s6 + $0x30] sm:$0xff]  ;;  %v599_v13 = vld [vmem:[%s2841_s6 + $0x38] sm:$0xff]  ;;  %s1670_s30 = scalar_lea.sflag [#allocation5], %s2794_s8  ;;  %s2523_s13 = smov [#allocation9]  }
  0x93   : > { %v600_v14 = vld [vmem:[%s2841_s6 + $0x40] sm:$0xff]  ;;  %v2850_v16 = vld [vmem:[%s2841_s6 + $0x8] sm:$0xff]  ;;  %v594_v17 = vld [vmem:[%s2841_s6 + $0x10] sm:$0xff]  ;;  %s3213_s5 = scalar_lea.vmem [#allocation10], %s2135_s12  ;;  %s2393_s10 = sshll.u32 %s2523_s13, 4  ;;  %s2394_s10 = int_to_ptr.vmem [resolvable:$false] %s2393_s10 }
  0x94   : > { %636 = vperm.xlu1 %2234, %v607_v3   ;;  %626 = vperm.xlu0 %2233, %v605_v10   ;;  %v2847_v15 = vld [vmem:[%s2841_s6] sm:$0xff]  ;;  %v601_v24 = vld [vmem:[%s2841_s6 + $0x48] sm:$0xff]  ;;  %v602_v27 = vld [vmem:[%s2841_s6 + $0x50] sm:$0xff]  ;;  %s2395_s27 = scalar_lea.vmem %s2394_s10, 3072 }
  0x95   : > { %v603_v28 = vld [vmem:[%s2841_s6 + $0x58] sm:$0xff]  ;;  %v2872_v30 = vld [vmem:[%s2841_s6 + $0x20] sm:$0xff]  ;;  %v597_v31 = vld [vmem:[%s2841_s6 + $0x28] sm:$0xff] }
  0x96   : > { %v2869_v29 = vld [vmem:[%s2841_s6 + $0x18] sm:$0xff] }
  0x97   : > { %p3377_p8 = scmp.ne.s32.totalorder %s3376_s26, 0 }
  0x98   : > { %697 = vrot.lane.b32.xlu1 %v605_v10, %s2520_s19  ;;  %695 = vrot.lane.b32.xlu0 %v604_v2, %s2520_s19  ;;  %v965_v2 = vld [vmem:[%s3325_s7 + $0x30] sm:$0xff] }
  0x9c   : > { %701 = vrot.lane.b32.xlu1 %v607_v3, %s2520_s19  ;;  %699 = vrot.lane.b32.xlu0 %v606_v1, %s2520_s19  ;;  %v966_v1 = vld [vmem:[%s3325_s7 + $0x38] sm:$0xff] }
 0x10f   : > { %v632_v18 = vpop.permute.xlu1 %631  ;;  %v622_v19 = vpop.permute.xlu0 %621 }
 0x110   : > { %v2853_v20 = vadd.f32 %v632_v18, %v598_v12  ;;  %v2855_v21 = vadd.f32 %v632_v18, %v599_v13  ;;  %v2857_v22 = vadd.f32 %v632_v18, %v600_v14  ;;  %v2860_v23 = vadd.f32 %v622_v19, %v2847_v15 }
 0x111   : > { %v2864_v25 = vadd.f32 %v622_v19, %v2850_v16  ;;  %v641_v26 = vadd.f32 %v622_v19, %v594_v17 }
 0x113   : > { %v637_v32 = vpop.permute.xlu1 %636  ;;  %v627_v33 = vpop.permute.xlu0 %626 }
 0x114   : > { %v2875_v34 = vadd.f32 %v637_v32, %v601_v24  ;;  %v2877_v35 = vadd.f32 %v637_v32, %v602_v27  ;;  %v650_v36 = vadd.f32 %v637_v32, %v603_v28  ;;  %v2880_v37 = vadd.f32 %v627_v33, %v2869_v29 }
 0x115   : > { %v2883_v38 = vadd.f32 %v627_v33, %v2872_v30  ;;  %v644_v39 = vadd.f32 %v627_v33, %v597_v31 }
 0x116   : > { %v2071_v42 = vpack.c.bf16 %v2880_v37, %v2860_v23  ;;  %v2073_v43 = vpack.c.bf16 %v2877_v35, %v2855_v21  ;;  %v2075_v44 = vpack.c.bf16 %v2875_v34, %v2853_v20  ;;  %v2894_v45 = vpack.c.bf16 %v650_v36, %v2857_v22 }
 0x117   : > { %v698_v46 = vpop.permute.xlu1 %697  ;;  %v696_v47 = vpop.permute.xlu0 %695  ;;  %v2069_v48 = vpack.c.bf16 %v2883_v38, %v2864_v25  ;;  %v2898_v49 = vpack.c.bf16 %v644_v39, %v641_v26 }
 0x118   : > { %v708_v50 = vadd.f32 %v698_v46, %v692_v40  ;;  %v707_v51 = vadd.f32 %v696_v47, %v691_v41 }
 0x11a   : > { %719 = vrot.lane.b32.xlu1 %v708_v50, %s2522_s22  ;;  %717 = vrot.lane.b32.xlu0 %v707_v51, %s2522_s22 }
 0x11b   : > { %v702_v54 = vpop.permute.xlu1 %701  ;;  %v700_v55 = vpop.permute.xlu0 %699 }
 0x11c   : > { %v710_v56 = vadd.f32 %v702_v54, %v694_v52  ;;  %v709_v57 = vadd.f32 %v700_v55, %v693_v53 }
 0x11e   : > { %723 = vrot.lane.b32.xlu1 %v710_v56, %s2522_s22  ;;  %721 = vrot.lane.b32.xlu0 %v709_v57, %s2522_s22 }
 0x122   : > { %752 = vrot.lane.b32.xlu1 %v2864_v25, %s2522_s22  ;;  %750 = vrot.lane.b32.xlu0 %v2860_v23, %s2522_s22 }
 0x126   : > { %758 = vrot.lane.b32.xlu1 %v2883_v38, %s2522_s22  ;;  %756 = vrot.lane.b32.xlu0 %v2880_v37, %s2522_s22 }
 0x12a   : > { %764 = vrot.lane.b32.xlu1 %v2855_v21, %s2522_s22  ;;  %762 = vrot.lane.b32.xlu0 %v2853_v20, %s2522_s22 }
 0x12e   : > { %770 = vrot.lane.b32.xlu1 %v2877_v35, %s2522_s22  ;;  %768 = vrot.lane.b32.xlu0 %v2875_v34, %s2522_s22 }
 0x132   : > { %823 = vrot.lane.b32.xlu1 %v641_v26, %s2520_s19  ;;  %821 = vrot.lane.b32.xlu0 %v2864_v25, %s2520_s19 }
 0x136   : > { %829 = vrot.lane.b32.xlu1 %v644_v39, %s2520_s19  ;;  %827 = vrot.lane.b32.xlu0 %v2883_v38, %s2520_s19 }
 0x13a   : > { %825 = vrot.lane.b32.xlu1 %v2880_v37, %s2520_s19  ;;  %819 = vrot.lane.b32.xlu0 %v2860_v23, %s2520_s19 }
 0x13e   : > { %835 = vrot.lane.b32.xlu1 %v2857_v22, %s2520_s19  ;;  %833 = vrot.lane.b32.xlu0 %v2855_v21, %s2520_s19 }
 0x142   : > { %841 = vrot.lane.b32.xlu1 %v650_v36, %s2520_s19  ;;  %839 = vrot.lane.b32.xlu0 %v2877_v35, %s2520_s19 }
 0x146   : > { %837 = vrot.lane.b32.xlu1 %v2875_v34, %s2520_s19  ;;  %831 = vrot.lane.b32.xlu0 %v2853_v20, %s2520_s19  ;;  %v2085_v20 = vpack.c.bf16 %v2829_v8, %v2823_v5 }
 0x14a   : > { %760 = vrot.lane.b32.xlu1 %v644_v39, %s2522_s22  ;;  %754 = vrot.lane.b32.xlu0 %v641_v26, %s2522_s22 }
 0x14e   : > { %772 = vrot.lane.b32.xlu1 %v650_v36, %s2522_s22  ;;  %766 = vrot.lane.b32.xlu0 %v2857_v22, %s2522_s22  ;;  %s3373_s22 = sld [smem:[#allocation25_spill]]  ;;  %v608_v22 = vlaneseq }
 0x150   : > { %v609_v24 = vand.u32 127, %v608_v22 }
 0x152   : > { %2241 = vrot.lane.b32.xlu1 %v2521_v11, %s2520_s19  ;;  %2236 = vrot.lane.b32.xlu0 %v2521_v11, %s2520_s19  ;;  %v689_v26 = vadd.s32 4294967295, %v609_v24  ;;  %s3175_s19 = scalar_lea.vmem [#allocation9], %s2135_s12 }
 0x153   : > { %s1690_s25 = sshll.u32 %s3175_s19, 4  ;;  %s3207_s25 = int_to_ptr.vmem [resolvable:$true] %s1690_s25 }
 0x154   : > { %v1331_v3 = vld [vmem:[%s3373_s22 + $0x8] sm:$0xff]  ;;  %v1330_v10 = vld [vmem:[%s3373_s22] sm:$0xff]  ;;  %v1333_v12 = vld [vmem:[%s3373_s22 + $0x18] sm:$0xff]  ;;  %vm690_vm1 = vcmp.ge.s32.totalorder %v689_v26, 0  ;;  %s2389_s11 = scalar_lea.vmem %s3207_s25, 1536  ;;  %p2396_p6 = scmp.lt.s32.totalorder %s3207_s25, %s2394_s10 }
 0x155   : > { %v1332_v13 = vld [vmem:[%s3373_s22 + $0x10] sm:$0xff]  ;;  %v1335_v14 = vld [vmem:[%s3373_s22 + $0x28] sm:$0xff]  ;;  %v1334_v17 = vld [vmem:[%s3373_s22 + $0x20] sm:$0xff]  ;;  %p2390_p7 = scmp.ne.s32.totalorder %s3207_s25, %s2389_s11  ;;  %p2397_p2 = scmp.lt.s32.totalorder %s2395_s27, %s2389_s11 }
 0x156   : > { %974 = vperm.xlu1 %2234, %v960_v59   ;;  %969 = vperm.xlu0 %2233, %v959_v60   ;;  %v1337_v18 = vld [vmem:[%s3373_s22 + $0x38] sm:$0xff]  ;;  %v1336_v19 = vld [vmem:[%s3373_s22 + $0x30] sm:$0xff] }
 0x157   : > { %p2391_p0 = pnand %p2390_p7, %p3377_p8  ;;  %p2398_p10 = por %p2397_p2, %p2396_p6 }
 0x159   : > { %p2392_p4 = pneg %p2391_p0 }
 0x15a   : > { %984 = vperm.xlu1 %2234, %v962_v61   ;;  %979 = vperm.xlu0 %2233, %v961_v62  }
 0x15b   : > { %p2399_p13 = pnand %p2398_p10, %p2392_p4 }
 0x15e   : > { %994 = vperm.xlu1 %2234, %v964_v63   ;;  %989 = vperm.xlu0 %2233, %v963_v0  }
 0x162   : > { %1004 = vperm.xlu1 %2234, %v966_v1   ;;  %999 = vperm.xlu0 %2233, %v965_v2  }
 0x166   : > { %1345 = vperm.xlu1 %2234, %v1331_v3   ;;  %1340 = vperm.xlu0 %2233, %v1330_v10  }
 0x16a   : > { %1355 = vperm.xlu1 %2234, %v1333_v12   ;;  %1350 = vperm.xlu0 %2233, %v1332_v13  }
 0x16e   : > { %1365 = vperm.xlu1 %2234, %v1335_v14   ;;  %1360 = vperm.xlu0 %2233, %v1334_v17  }
 0x172   : > { %1375 = vperm.xlu1 %2234, %v1337_v18   ;;  %1370 = vperm.xlu0 %2233, %v1336_v19  }
 0x18c   : > { %v720_v27 = vpop.permute.xlu1 %719  ;;  %v718_v28 = vpop.permute.xlu0 %717 }
 0x18d   : > { %v730_v31 = vsel %vm690_vm1, %v720_v27, 0.0  ;;  %v729_v32 = vsel %vm690_vm1, %v718_v28, 0.0 }
 0x18e   : > { %735 = vst.msk [vmem:[#allocation2 + $0x18] sm:$0xff] %vm733_vm2, %v730_v31  ;;  %734 = vst.msk [vmem:[#allocation2] sm:$0xff] %vm733_vm2, %v729_v32 }
 0x190   : > { %v724_v33 = vpop.permute.xlu1 %723  ;;  %v722_v36 = vpop.permute.xlu0 %721 }
 0x191   : > { %v732_v39 = vsel %vm690_vm1, %v724_v33, 0.0  ;;  %v731_v40 = vsel %vm690_vm1, %v722_v36, 0.0  ;;  %v2087_v36 = vpack.c.bf16 %v2827_v7, %v2821_v4 }
 0x192   : > { %737 = vst.msk [vmem:[#allocation2 + $0x48] sm:$0xff] %vm733_vm2, %v732_v39  ;;  %736 = vst.msk [vmem:[#allocation2 + $0x30] sm:$0xff] %vm733_vm2, %v731_v40 }
 0x194   : > { %v3008_v41 = vpop.permute.xlu1 %752  ;;  %v751_v46 = vpop.permute.xlu0 %750 }
 0x195   : > { %v774_v47 = vsel %vm733_vm2, %v751_v46, %v3008_v41  ;;  %795 = vst.msk [vmem:[#allocation2] sm:$0xff] %vm794_vm3, %v751_v46 }
 0x198   : > { %v3013_v50 = vpop.permute.xlu1 %758  ;;  %v757_v51 = vpop.permute.xlu0 %756 }
 0x199   : > { %v776_v52 = vsel %vm733_vm2, %v757_v51, %v3013_v50  ;;  %798 = vst.msk [vmem:[#allocation2 + $0x18] sm:$0xff] %vm794_vm3, %v757_v51 }
 0x19a   : > { %v2061_v53 = vpack.c.bf16 %v776_v52, %v774_v47 }
 0x19c   : > { %v3018_v54 = vpop.permute.xlu1 %764  ;;  %v763_v55 = vpop.permute.xlu0 %762  ;;  %2062 = vmatprep.subr.bf16.mxu0 %v2061_v53  ;;  %v917_v60 = vld [vmem:[#allocation2] sm:$0xff] }
 0x19d   : > { %v778_v56 = vsel %vm733_vm2, %v763_v55, %v3018_v54  ;;  %801 = vst.msk [vmem:[#allocation2 + $0x30] sm:$0xff] %vm794_vm3, %v763_v55 }
 0x1a0   : > { %v3023_v57 = vpop.permute.xlu1 %770  ;;  %v769_v59 = vpop.permute.xlu0 %768  ;;  %v920_v61 = vld [vmem:[#allocation2 + $0x18] sm:$0xff] }
 0x1a1   : > { %v780_v62 = vsel %vm733_vm2, %v769_v59, %v3023_v57  ;;  %804 = vst.msk [vmem:[#allocation2 + $0x48] sm:$0xff] %vm794_vm3, %v769_v59  ;;  %v2063_v63 = vpack.c.bf16 %v920_v61, %v917_v60 }
 0x1a2   : > { %v2065_v0 = vpack.c.bf16 %v780_v62, %v778_v56 }
 0x1a3   : > { %2064 = vmatpush1.bf16.msra.mxu0 %v2063_v63  ;;  %v913_v63 = vld [vmem:[#allocation8 + $0x20] sm:$0xff] }
 0x1a4   : > { %v824_v1 = vpop.permute.xlu1 %823  ;;  %v822_v2 = vpop.permute.xlu0 %821  ;;  %2066 = vmatprep.subr.bf16.mxu0 %v2065_v0  ;;  %v923_v13 = vld [vmem:[#allocation2 + $0x30] sm:$0xff]  ;;  %v2113_v0 = vpack.c.bf16 %v2831_v9, %v2825_v6  ;;  %v3097_v6 = vld [vmem:[%s3374_s21] sm:$0xff] }
 0x1a5   : > { %866 = vst.msk [vmem:[#allocation2 + $0xd0] sm:$0xff] %vm843_vm4, %v824_v1  ;;  %v845_v3 = vsel %vm843_vm4, %v822_v2, %v824_v1  ;;  %v915_v1 = vld [vmem:[#allocation8 + $0x30] sm:$0xff] }
 0x1a8   : > { %v830_v10 = vpop.permute.xlu1 %829  ;;  %v828_v12 = vpop.permute.xlu0 %827  ;;  %v926_v14 = vld [vmem:[#allocation2 + $0x48] sm:$0xff] }
 0x1a9   : > { %869 = vst.msk [vmem:[#allocation2 + $0xe8] sm:$0xff] %vm843_vm4, %v830_v10  ;;  %v847_v17 = vsel %vm843_vm4, %v828_v12, %v830_v10  ;;  %v2067_v18 = vpack.c.bf16 %v926_v14, %v923_v13 }
 0x1aa   : > { %v2077_v25 = vpack.c.bf16 %v847_v17, %v845_v3 }
 0x1ab   : > { %2068 = vmatpush1.bf16.msra.mxu0 %v2067_v18 }
 0x1ac   : > { %v826_v19 = vpop.permute.xlu1 %825  ;;  %v820_v22 = vpop.permute.xlu0 %819  ;;  %2070 = vmatprep.subr.bf16.mxu0 %v2069_v48 }
 0x1ad   : > { %v846_v24 = vsel %vm843_vm4, %v826_v19, %v828_v12  ;;  %v844_v26 = vsel %vm843_vm4, %v820_v22, %v822_v2  ;;  %v916_v2 = vld [vmem:[#allocation8 + $0x38] sm:$0xff] }
 0x1ae   : > { %v2079_v37 = vpack.c.bf16 %v846_v24, %v844_v26 }
 0x1af   : > { %2072 = vmatpush1.bf16.msra.mxu0 %v2071_v42 }
 0x1b0   : > { %v836_v27 = vpop.permute.xlu1 %835  ;;  %v834_v28 = vpop.permute.xlu0 %833  ;;  %2074 = vmatprep.subr.bf16.mxu0 %v2073_v43 }
 0x1b1   : > { %872 = vst.msk [vmem:[#allocation2 + $0x100] sm:$0xff] %vm843_vm4, %v836_v27  ;;  %v849_v31 = vsel %vm843_vm4, %v834_v28, %v836_v27 }
 0x1b3   : > { %2076 = vmatpush1.bf16.msra.mxu0 %v2075_v44 }
 0x1b4   : > { %v842_v38 = vpop.permute.xlu1 %841  ;;  %v840_v48 = vpop.permute.xlu0 %839  ;;  %2078 = vmatprep.subr.bf16.mxu0 %v2077_v25 }
 0x1b5   : > { %875 = vst.msk [vmem:[#allocation2 + $0x118] sm:$0xff] %vm843_vm4, %v842_v38  ;;  %v851_v23 = vsel %vm843_vm4, %v840_v48, %v842_v38 }
 0x1b6   : > { %v2081_v42 = vpack.c.bf16 %v851_v23, %v849_v31 }
 0x1b7   : > { %2080 = vmatpush1.bf16.msra.mxu0 %v2079_v37 }
 0x1b8   : > { %v838_v21 = vpop.permute.xlu1 %837  ;;  %v832_v35 = vpop.permute.xlu0 %831  ;;  %2082 = vmatprep.subr.bf16.mxu0 %v2081_v42 }
 0x1b9   : > { %v850_v43 = vsel %vm843_vm4, %v838_v21, %v840_v48  ;;  %v848_v32 = vsel %vm843_vm4, %v832_v35, %v834_v28 }
 0x1ba   : > { %v2083_v34 = vpack.c.bf16 %v850_v43, %v848_v32 }
 0x1bc   : > { %v761_v44 = vpop.permute.xlu1 %760  ;;  %v755_v33 = vpop.permute.xlu0 %754  ;;  %2084 = vmatpush1.bf16.msra.mxu0 %v2083_v34 }
 0x1bd   : > { %v777_v39 = vsel %vm733_vm2, %v3013_v50, %v761_v44  ;;  %v775_v40 = vsel %vm733_vm2, %v3008_v41, %v755_v33  ;;  %2086 = vmatprep.subr.bf16.mxu0 %v2085_v20  ;;  %v910_v50 = vld [vmem:[#allocation8 + $0x8] sm:$0xff] }
 0x1be   : > { %v2089_v46 = vpack.c.bf16 %v777_v39, %v775_v40 }
 0x1c0   : > { %v773_v47 = vpop.permute.xlu1 %772  ;;  %v767_v51 = vpop.permute.xlu0 %766  ;;  %2088 = vmatpush1.bf16.msra.mxu0 %v2087_v36  ;;  %2090 = vmatprep.subr.bf16.mxu1 %v2089_v46 }
 0x1c1   : > { %v781_v5 = vsel %vm733_vm2, %v3023_v57, %v773_v47  ;;  %v779_v8 = vsel %vm733_vm2, %v3018_v54, %v767_v51  ;;  %2092 = vmatpush3.bf16.msra.mxu1 %v2089_v46  ;;  %v912_v54 = vld [vmem:[#allocation8 + $0x18] sm:$0xff] }
 0x1c2   : > { %v2093_v4 = vpack.c.bf16 %v781_v5, %v779_v8 }
 0x1c3   : > { %1928 = vmatmul.mubr.msk.f32.vlgmr.msra.gmra.mrb[0].mxu0 %vm1007_vm0, %v2939_v58  ;;  %v911_v58 = vld [vmem:[#allocation8 + $0x10] sm:$0xff] }
 0x1c4   : > { %v2237_v7 = vpop.permute.xlu0 %2236  ;;  %2094 = vmatprep.subr.bf16.mxu1 %v2093_v4  ;;  %1102 = vmatprep.mubr.f32.mxu0 %v2521_v11  ;;  %v2242_v41 = vpop.permute.xlu1 %2241 }
 0x1c5   : > { %v2239_v52 = vunpack.i.h.bf16 %v2237_v7  ;;  %v2238_v53 = vunpack.i.l.bf16 %v2237_v7  ;;  %2096 = vmatpush3.bf16.msra.mxu1 %v2093_v4  ;;  %v2244_v55 = vunpack.i.h.bf16 %v2242_v41  ;;  %v2243_v56 = vunpack.i.l.bf16 %v2242_v41 }
 0x1c6   : > { %2098 = vmatprep.subr.bf16.mxu1 %v2898_v49 }
 0x1c7   : > { %894 = vst.msk [vmem:[#allocation2 + $0xe8] sm:$0xff] %vm892_vm5, %v2239_v52  ;;  %893 = vst.msk [vmem:[#allocation2 + $0xd0] sm:$0xff] %vm892_vm5, %v2238_v53  ;;  %1929 = vmatmul.mubr.msk.f32.gmra.mrb[2].mxu0 %vm1007_vm0, %v910_v50 }
 0x1c8   : > { %896 = vst.msk [vmem:[#allocation2 + $0x118] sm:$0xff] %vm892_vm5, %v2244_v55  ;;  %895 = vst.msk [vmem:[#allocation2 + $0x100] sm:$0xff] %vm892_vm5, %v2243_v56  ;;  %1108 = vmatprep.mubr.f32.mxu0 %v2521_v11 }
 0x1c9   : > { %2100 = vmatpush3.bf16.msra.mxu1 %v2898_v49 }
 0x1ca   : > { %2102 = vmatprep.subr.bf16.mxu1 %v2894_v45 }
 0x1cb   : > { %1930 = vmatmul.mubr.msk.f32.gmra.mrb[4].mxu0 %vm1007_vm0, %v911_v58 }
 0x1cc   : > { %1114 = vmatprep.mubr.f32.mxu0 %v2521_v11 }
 0x1cd   : > { %2104 = vmatpush3.bf16.msra.mxu1 %v2894_v45  ;;  %v914_v45 = vld [vmem:[#allocation8 + $0x28] sm:$0xff] }
 0x1ce   : > { %v943_v57 = vld [vmem:[#allocation2 + $0xd0] sm:$0xff]  ;;  %v946_v59 = vld [vmem:[#allocation2 + $0xe8] sm:$0xff] }
 0x1cf   : > { %v949_v60 = vld [vmem:[#allocation2 + $0x100] sm:$0xff]  ;;  %1931 = vmatmul.mubr.msk.f32.gmra.mrb[6].mxu0 %vm1007_vm0, %v912_v54  ;;  %v2105_v61 = vpack.c.bf16 %v946_v59, %v943_v57  ;;  %v952_v62 = vld [vmem:[#allocation2 + $0x118] sm:$0xff] }
 0x1d0   : > { %1120 = vmatprep.mubr.f32.mxu0 %v2521_v11  ;;  %v2109_v49 = vpack.c.bf16 %v952_v62, %v949_v60 }
 0x1d1   : > { %2106 = vmatprep.subr.bf16.mxu1 %v2105_v61 }
 0x1d2   : > { %2108 = vmatpush3.bf16.msra.mxu1 %v2105_v61 }
 0x1d3   : > { %1932 = vmatmul.mubr.msk.f32.gmra.mrb[8].mxu0 %vm1007_vm0, %v913_v63  ;;  %2110 = vmatprep.subr.bf16.mxu1 %v2109_v49 }
 0x1d4   : > { %1126 = vmatprep.mubr.f32.mxu0 %v2521_v11 }
 0x1d5   : > { %v3101_v10 = vpop.permute.xlu0 %969  ;;  %v975_v18 = vpop.permute.xlu1 %974 }
 0x1d6   : > { %2112 = vmatpush3.bf16.msra.mxu1 %v2109_v49 }
 0x1d7   : > { %1933 = vmatmul.mubr.msk.f32.gmra.mrb[10].mxu0 %vm1007_vm0, %v914_v45  ;;  %2114 = vmatprep.subr.bf16.mxu1 %v2113_v0 }
 0x1d8   : > { %1132 = vmatprep.mubr.f32.mxu0 %v2521_v11 }
 0x1d9   : > { %v3105_v24 = vpop.permute.xlu0 %979  ;;  %v985_v35 = vpop.permute.xlu1 %984 }
 0x1da   : > { %2116 = vmatpush3.bf16.msra.mxu1 %v2113_v0 }
 0x1db   : > { %1934 = vmatmul.mubr.msk.f32.gmra.mrb[12].mxu0 %vm1007_vm0, %v915_v1 }
 0x1dc   : > { %1138 = vmatprep.mubr.f32.mxu0 %v2521_v11 }
 0x1dd   : > { %2030 = vmatmul.mubr.msk.f32.vlgmr.msra.gmra.mrb[0].mxu1 %vm1007_vm0, %v910_v50  ;;  %v3109_v32 = vpop.permute.xlu0 %989  ;;  %v3113_v40 = vpop.permute.xlu1 %994 }
 0x1de   : > { %2032 = vmatprep.mubr.msk.f32.mxu1 %vm1007_vm0, %v911_v58 }
 0x1df   : > { %1935 = vmatmul.mubr.msk.f32.gmra.mrb[14].mxu0 %vm1007_vm0, %v916_v2 }
 0x1e0   : > { %2049 = vmatprep.mubr.msk.f32.mxu0 %vm1378_vm6, %v3097_v6 }
 0x1e1   : > { %2033 = vmatmul.mubr.msk.f32.gmra.mrb[2].mxu1 %vm1007_vm0, %v912_v54  ;;  %v3117_v50 = vpop.permute.xlu0 %999  ;;  %v1005_v0 = vpop.permute.xlu1 %1004 }
 0x1e2   : > { %2035 = vmatprep.mubr.msk.f32.mxu1 %vm1007_vm0, %v913_v63 }
 0x1e5   : > { %2036 = vmatmul.mubr.msk.f32.gmra.mrb[4].mxu1 %vm1007_vm0, %v914_v45 }
 0x1e6   : > { %2038 = vmatprep.mubr.msk.f32.mxu1 %vm1007_vm0, %v915_v1 }
 0x1e9   : > { %2039 = vmatmul.mubr.msk.f32.gmra.mrb[6].mxu1 %vm1007_vm0, %v916_v2 }
 0x1ea   : > { %1467 = vmatprep.mubr.f32.mxu1 %v2521_v11 }
 0x296   : > { %v1098_v9 = vpop.f32.mrb[0].mxu0 }
 0x297   : > { %v1100_v3 = vpop.f32.mrb[1].mxu0  ;;  %v1099_v12 = vadd.f32 %v1098_v9, %v3101_v10 }
 0x298   : > { %v1101_v13 = vadd.f32 %v1100_v3, %v3101_v10 }
 0x299   : > { %v1250_v19 = vmul.f32 0.5, %v1099_v12 }
 0x29a   : > { %v1104_v14 = vpop.f32.mrb[2].mxu0  ;;  %v1251_v26 = vmul.f32 0.5, %v1101_v13 }
 0x29b   : > { %v1106_v17 = vpop.f32.mrb[3].mxu0  ;;  %v1105_v22 = vadd.f32 %v1104_v14, %v975_v18  ;;  %2245 = vtanh.f32 %v1250_v19 }
 0x29c   : > { %v1107_v27 = vadd.f32 %v1106_v17, %v975_v18  ;;  %2247 = vtanh.f32 %v1251_v26 }
 0x29d   : > { %v1253_v48 = vmul.f32 0.5, %v1105_v22 }
 0x29e   : > { %v1110_v28 = vpop.f32.mrb[4].mxu0  ;;  %v1254_v23 = vmul.f32 0.5, %v1107_v27 }
 0x29f   : > { %v1111_v31 = vadd.f32 %v1110_v28, %v3105_v24  ;;  %v1112_v25 = vpop.f32.mrb[5].mxu0  ;;  %2249 = vtanh.f32 %v1253_v48 }
 0x2a0   : > { %v1113_v38 = vadd.f32 %v1112_v25, %v3105_v24  ;;  %2251 = vtanh.f32 %v1254_v23 }
 0x2a1   : > { %v1256_v42 = vmul.f32 0.5, %v1111_v31 }
 0x2a2   : > { %v1116_v37 = vpop.f32.mrb[6].mxu0  ;;  %v1257_v43 = vmul.f32 0.5, %v1113_v38 }
 0x2a3   : > { %v1118_v21 = vpop.f32.mrb[7].mxu0  ;;  %2253 = vtanh.f32 %v1256_v42  ;;  %v1117_v34 = vadd.f32 %v1116_v37, %v985_v35 }
 0x2a4   : > { %2255 = vtanh.f32 %v1257_v43  ;;  %v1119_v36 = vadd.f32 %v1118_v21, %v985_v35 }
 0x2a5   : > { %v2246_v47 = vpop.eup %2245  ;;  %v1259_v51 = vmul.f32 0.5, %v1117_v34 }
 0x2a6   : > { %v1122_v20 = vpop.f32.mrb[8].mxu0  ;;  %v2248_v4 = vpop.eup %2247  ;;  %v1260_v7 = vmul.f32 0.5, %v1119_v36  ;;  %v1274_v52 = vadd.f32 1.0, %v2246_v47 }
 0x2a7   : > { %v1123_v44 = vadd.f32 %v1122_v20, %v3109_v32  ;;  %v1124_v33 = vpop.f32.mrb[9].mxu0  ;;  %v1275_v56 = vadd.f32 1.0, %v2248_v4 }
 0x2a8   : > { %v1125_v39 = vadd.f32 %v1124_v33, %v3109_v32  ;;  %v1286_v45 = vmul.f32 0.5, %v1274_v52 }
 0x2a9   : > { %2257 = vtanh.f32 %v1123_v44  ;;  %v2250_v55 = vpop.eup %2249  ;;  %v1287_v12 = vmul.f32 0.5, %v1275_v56 }
 0x2aa   : > { %2259 = vtanh.f32 %v1125_v39  ;;  %v1128_v46 = vpop.f32.mrb[10].mxu0  ;;  %v2252_v57 = vpop.eup %2251  ;;  %v1277_v1 = vadd.f32 1.0, %v2250_v55 }
 0x2ab   : > { %v1129_v5 = vadd.f32 %v1128_v46, %v3113_v40  ;;  %v1130_v8 = vpop.f32.mrb[11].mxu0  ;;  %v1278_v13 = vadd.f32 1.0, %v2252_v57 }
 0x2ac   : > { %v1131_v41 = vadd.f32 %v1130_v8, %v3113_v40  ;;  %v1289_v48 = vmul.f32 0.5, %v1277_v1 }
 0x2ad   : > { %2261 = vtanh.f32 %v1129_v5  ;;  %v2254_v61 = vpop.eup %2253  ;;  %v1290_v42 = vmul.f32 0.5, %v1278_v13 }
 0x2ae   : > { %2263 = vtanh.f32 %v1131_v41  ;;  %v1134_v53 = vpop.f32.mrb[12].mxu0  ;;  %v2256_v49 = vpop.eup %2255  ;;  %v1280_v23 = vadd.f32 1.0, %v2254_v61 }
 0x2af   : > { %2265 = vtanh.f32 %v1259_v51  ;;  %v1135_v58 = vadd.f32 %v1134_v53, %v3117_v50  ;;  %v1136_v54 = vpop.f32.mrb[13].mxu0  ;;  %v1281_v21 = vadd.f32 1.0, %v2256_v49 }
 0x2b0   : > { %2267 = vtanh.f32 %v1260_v7  ;;  %v1137_v59 = vadd.f32 %v1136_v54, %v3117_v50  ;;  %v2031_v60 = vpop.f32.mrb[0].mxu1  ;;  %v1292_v51 = vmul.f32 0.5, %v1280_v23 }
 0x2b1   : > { %2269 = vtanh.f32 %v1135_v58  ;;  %v1217_v62 = vadd.f32 %v2031_v60, %v975_v18  ;;  %v1211_v63 = vpop.f32.mrb[1].mxu1  ;;  %v1293_v4 = vmul.f32 0.5, %v1281_v21  ;;  %v1326_v21 = vld [vmem:[%s3374_s21 + $0x20] sm:$0xff] }
 0x2b2   : > { %2271 = vtanh.f32 %v1137_v59  ;;  %v1212_v2 = vadd.f32 %v1211_v63, %v3101_v10  ;;  %v1140_v9 = vpop.f32.mrb[14].mxu0 }
 0x2b3   : > { %v2258_v3 = vpop.eup %2257  ;;  %v1255_v14 = vmul.f32 0.5, %v1217_v62  ;;  %v1141_v17 = vadd.f32 %v1140_v9, %v1005_v0  ;;  %v1142_v19 = vpop.f32.mrb[15].mxu0 }
 0x2b4   : > { %v2260_v22 = vpop.eup %2259  ;;  %v1252_v26 = vmul.f32 0.5, %v1212_v2  ;;  %v1143_v27 = vadd.f32 %v1142_v19, %v1005_v0  ;;  %v2034_v28 = vpop.f32.mrb[2].mxu1  ;;  %v1310_v18 = vmul.f32 %v2258_v3, %v1286_v45 }
 0x2b5   : > { %2273 = vtanh.f32 %v1255_v14  ;;  %v1227_v31 = vadd.f32 %v2034_v28, %v985_v35  ;;  %v1221_v25 = vpop.f32.mrb[3].mxu1  ;;  %v1311_v38 = vmul.f32 %v2260_v22, %v1287_v12 }
 0x2b6   : > { %2275 = vtanh.f32 %v1252_v26  ;;  %v1222_v10 = vadd.f32 %v1221_v25, %v3105_v24 }
 0x2b7   : > { %v2262_v37 = vpop.eup %2261  ;;  %2277 = vtanh.f32 %v1141_v17  ;;  %v1261_v43 = vmul.f32 0.5, %v1227_v31 }
 0x2b8   : > { %v2264_v20 = vpop.eup %2263  ;;  %2279 = vtanh.f32 %v1143_v27  ;;  %v1258_v34 = vmul.f32 0.5, %v1222_v10  ;;  %v2037_v44 = vpop.f32.mrb[4].mxu1  ;;  %v1313_v33 = vmul.f32 %v2262_v37, %v1289_v48  ;;  %v1323_v10 = vld [vmem:[%s3374_s21 + $0x8] sm:$0xff] }
 0x2b9   : > { %v2266_v36 = vpop.eup %2265  ;;  %2281 = vtanh.f32 %v1261_v43  ;;  %v1237_v35 = vadd.f32 %v2037_v44, %v3113_v40  ;;  %v1231_v39 = vpop.f32.mrb[5].mxu1  ;;  %v1314_v46 = vmul.f32 %v2264_v20, %v1290_v42  ;;  %v1325_v42 = vld [vmem:[%s3374_s21 + $0x18] sm:$0xff]  ;;  %v1327_v43 = vld [vmem:[%s3374_s21 + $0x28] sm:$0xff]  ;;  %v1328_v20 = vld [vmem:[%s3374_s21 + $0x30] sm:$0xff] }
 0x2ba   : > { %v2268_v47 = vpop.eup %2267  ;;  %2283 = vtanh.f32 %v1258_v34  ;;  %v1232_v24 = vadd.f32 %v1231_v39, %v3109_v32  ;;  %v2119_v5 = vpack.c.bf16 %v1313_v33, %v1310_v18  ;;  %v1283_v52 = vadd.f32 1.0, %v2266_v36  ;;  %v1329_v34 = vld [vmem:[%s3374_s21 + $0x38] sm:$0xff]  ;;  %v1346_v44 = vpop.permute.xlu1 %1345 }
 0x2bb   : > { %v2270_v8 = vpop.eup %2269  ;;  %2285 = vtanh.f32 %v1237_v35  ;;  %v2117_v7 = vpack.c.bf16 %v1314_v46, %v1311_v38  ;;  %v1284_v56 = vadd.f32 1.0, %v2268_v47  ;;  %v1341_v33 = vpop.permute.xlu0 %1340 }
 0x2bc   : > { %v2272_v41 = vpop.eup %2271  ;;  %2287 = vtanh.f32 %v1232_v24  ;;  %v2040_v53 = vpop.f32.mrb[6].mxu1  ;;  %v1316_v55 = vmul.f32 %v2270_v8, %v1292_v51  ;;  %v1295_v60 = vmul.f32 0.5, %v1283_v52 }
 0x2bd   : > { %v1247_v58 = vadd.f32 %v2040_v53, %v1005_v0  ;;  %v1241_v40 = vpop.f32.mrb[7].mxu1  ;;  %2118 = vmatprep.subr.bf16.mxu1 %v2117_v7  ;;  %v1317_v54 = vmul.f32 %v2272_v41, %v1293_v4  ;;  %v1296_v63 = vmul.f32 0.5, %v1284_v56 }
 0x2be   : > { %v1242_v57 = vadd.f32 %v1241_v40, %v3117_v50  ;;  %2120 = vmatpush1.bf16.msra.mxu1 %v2119_v5  ;;  %v1356_v51 = vpop.permute.xlu1 %1355 }
 0x2bf   : > { %v2274_v59 = vpop.eup %2273  ;;  %2289 = vtanh.f32 %v1247_v58  ;;  %v1351_v8 = vpop.permute.xlu0 %1350 }
 0x2c0   : > { %v2276_v32 = vpop.eup %2275  ;;  %v1279_v61 = vadd.f32 1.0, %v2274_v59  ;;  %2291 = vtanh.f32 %v1242_v57 }
 0x2c1   : > { %v2278_v62 = vpop.eup %2277  ;;  %v1276_v49 = vadd.f32 1.0, %v2276_v32 }
 0x2c2   : > { %v2280_v45 = vpop.eup %2279  ;;  %v1319_v1 = vmul.f32 %v2278_v62, %v1295_v60  ;;  %v1291_v3 = vmul.f32 0.5, %v1279_v61 }
 0x2c3   : > { %v2282_v2 = vpop.eup %2281  ;;  %v1320_v9 = vmul.f32 %v2280_v45, %v1296_v63  ;;  %v1288_v50 = vmul.f32 0.5, %v1276_v49  ;;  %v1361_v61 = vpop.permute.xlu0 %1360  ;;  %v2294_v63 = vld [vmem:[%s2841_s6 + $0x28] sm:$0xff]  ;;  %v2295_v45 = vld [vmem:[%s2841_s6 + $0x38] sm:$0xff] }
 0x2c4   : > { %v2284_v0 = vpop.eup %2283  ;;  %v1285_v12 = vadd.f32 1.0, %v2282_v2  ;;  %v2123_v13 = vpack.c.bf16 %v1319_v1, %v1316_v55  ;;  %v2296_v2 = vld [vmem:[%s2841_s6 + $0x10] sm:$0xff] }
 0x2c5   : > { %v2286_v14 = vpop.eup %2285  ;;  %v1282_v17 = vadd.f32 1.0, %v2284_v0  ;;  %v2121_v19 = vpack.c.bf16 %v1320_v9, %v1317_v54 }
 0x2c6   : > { %v2288_v22 = vpop.eup %2287  ;;  %v1315_v26 = vmul.f32 %v2286_v14, %v1291_v3  ;;  %v1297_v28 = vmul.f32 0.5, %v1285_v12 }
 0x2c7   : > { %2122 = vmatprep.subr.bf16.mxu1 %v2121_v19  ;;  %v1312_v27 = vmul.f32 %v2288_v22, %v1288_v50  ;;  %v1294_v31 = vmul.f32 0.5, %v1282_v17 }
 0x2c8   : > { %2124 = vmatpush1.bf16.msra.mxu1 %v2123_v13 }
 0x2c9   : > { %v2290_v18 = vpop.eup %2289  ;;  %v2125_v25 = vpack.c.bf16 %v1315_v26, %v1312_v27 }
 0x2ca   : > { %v2292_v38 = vpop.eup %2291  ;;  %v1321_v48 = vmul.f32 %v2290_v18, %v1297_v28  ;;  %v2297_v18 = vld [vmem:[%s2841_s6 + $0x48] sm:$0xff] }
 0x2cb   : > { %1944 = vmatmul.mubr.msk.f32.vlgmr.msra.gmra.mrb[8].mxu1 %vm1378_vm6, %v3097_v6  ;;  %2126 = vmatprep.subr.bf16.mxu0 %v2125_v25  ;;  %v1318_v23 = vmul.f32 %v2292_v38, %v1294_v31  ;;  %v1324_v6 = vld [vmem:[%s3374_s21 + $0x10] sm:$0xff] }
 0x2cc   : > { %2128 = vmatpush3.bf16.msra.mxu0 %v2125_v25  ;;  %1473 = vmatprep.mubr.f32.mxu1 %v2521_v11  ;;  %v2298_v25 = vld [vmem:[%s2841_s6 + $0x58] sm:$0xff] }
 0x2cd   : > { %v2129_v37 = vpack.c.bf16 %v1321_v48, %v1318_v23  ;;  %v2299_v48 = vld [vmem:[%s2841_s6 + $0x50] sm:$0xff] }
 0x2cf   : > { %1945 = vmatmul.mubr.msk.f32.gmra.mrb[10].mxu1 %vm1378_vm6, %v1323_v10  ;;  %2130 = vmatprep.subr.bf16.mxu0 %v2129_v37 }
 0x2d0   : > { %2132 = vmatpush3.bf16.msra.mxu0 %v2129_v37  ;;  %1479 = vmatprep.mubr.f32.mxu1 %v2521_v11 }
 0x2d3   : > { %1946 = vmatmul.mubr.msk.f32.gmra.mrb[12].mxu1 %vm1378_vm6, %v1324_v6  ;;  %2050 = vmatmul.mubr.msk.f32.vlgmr.msra.gmra.mrb[16].mxu0 %vm1378_vm6, %v1323_v10  ;;  %v2300_v10 = vld [vmem:[%s2841_s6 + $0x40] sm:$0xff] }
 0x2d4   : > { %1485 = vmatprep.mubr.f32.mxu1 %v2521_v11  ;;  %2052 = vmatprep.mubr.msk.f32.mxu0 %vm1378_vm6, %v1324_v6 }
 0x2d7   : > { %1947 = vmatmul.mubr.msk.f32.gmra.mrb[14].mxu1 %vm1378_vm6, %v1325_v42  ;;  %2053 = vmatmul.mubr.msk.f32.gmra.mrb[18].mxu0 %vm1378_vm6, %v1325_v42 }
 0x2d8   : > { %1491 = vmatprep.mubr.f32.mxu1 %v2521_v11  ;;  %2055 = vmatprep.mubr.msk.f32.mxu0 %vm1378_vm6, %v1326_v21 }
 0x2db   : > { %1948 = vmatmul.mubr.msk.f32.gmra.mrb[16].mxu1 %vm1378_vm6, %v1326_v21  ;;  %2056 = vmatmul.mubr.msk.f32.gmra.mrb[20].mxu0 %vm1378_vm6, %v1327_v43 }
 0x2dc   : > { %1497 = vmatprep.mubr.f32.mxu1 %v2521_v11  ;;  %2058 = vmatprep.mubr.msk.f32.mxu0 %vm1378_vm6, %v1328_v20 }
 0x2df   : > { %1949 = vmatmul.mubr.msk.f32.gmra.mrb[18].mxu1 %vm1378_vm6, %v1327_v43  ;;  %2059 = vmatmul.mubr.msk.f32.gmra.mrb[22].mxu0 %vm1378_vm6, %v1329_v34 }
 0x2e0   : > { %1503 = vmatprep.mubr.f32.mxu1 %v2521_v11 }
 0x2e3   : > { %1950 = vmatmul.mubr.msk.f32.gmra.mrb[20].mxu1 %vm1378_vm6, %v1328_v20 }
 0x2e4   : > { %1509 = vmatprep.mubr.f32.mxu1 %v2521_v11 }
 0x2e7   : > { %1951 = vmatmul.mubr.msk.f32.gmra.mrb[22].mxu1 %vm1378_vm6, %v1329_v34 }
 0x39e   : > { %v1469_v36 = vpop.f32.mrb[8].mxu1 }
 0x39f   : > { %v1470_v35 = vadd.f32 %v1469_v36, %v1341_v33  ;;  %v1471_v39 = vpop.f32.mrb[9].mxu1 }
 0x3a0   : > { %v1472_v46 = vadd.f32 %v1471_v39, %v1341_v33 }
 0x3a1   : > { %v1621_v47 = vadd.f32 %v1470_v35, %v2847_v15 }
 0x3a2   : > { %v1622_v24 = vadd.f32 %v1472_v46, %v2850_v16  ;;  %v1475_v5 = vpop.f32.mrb[10].mxu1 }
 0x3a3   : > { %v1633_v4 = vmul.f32 0.70710677, %v1621_v47  ;;  %v1476_v7 = vadd.f32 %v1475_v5, %v1346_v44  ;;  %v1477_v11 = vpop.f32.mrb[11].mxu1 }
 0x3a4   : > { %v1634_v41 = vmul.f32 0.70710677, %v1622_v24  ;;  %v1478_v52 = vadd.f32 %v1477_v11, %v1346_v44 }
 0x3a5   : > { %1645 = vst [vmem:[%s3175_s19] sm:$0xff] %v1633_v4  ;;  %v1624_v53 = vadd.f32 %v1476_v7, %v2869_v29  ;;  %v3181_v29 = vpop.permute.xlu1 %1365 }
 0x3a6   : > { %1646 = vst [vmem:[%s3175_s19 + $0x8] sm:$0xff] %v1634_v41  ;;  %v1625_v15 = vadd.f32 %v1478_v52, %v2872_v30  ;;  %v1481_v16 = vpop.f32.mrb[12].mxu1  ;;  %v2051_v55 = vpop.f32.mrb[16].mxu0  ;;  %v2293_v30 = vld [vmem:[%s2841_s6 + $0x30] sm:$0xff]  ;;  %s3205_s6 = scalar_lea.hbm %s3375_s20, %s2138_s1 }
 0x3a7   : > { %v1636_v56 = vmul.f32 0.70710677, %v1624_v53  ;;  %v1482_v58 = vadd.f32 %v1481_v16, %v1351_v8  ;;  %v1483_v40 = vpop.f32.mrb[13].mxu1  ;;  %v1588_v54 = vadd.f32 %v2051_v55, %v1346_v44  ;;  %v1582_v57 = vpop.f32.mrb[17].mxu0 }
 0x3a8   : > { %v1637_v59 = vmul.f32 0.70710677, %v1625_v15  ;;  %v1484_v32 = vadd.f32 %v1483_v40, %v1351_v8  ;;  %v1583_v60 = vadd.f32 %v1582_v57, %v1341_v33 }
 0x3a9   : > { %1648 = vst [vmem:[%s3175_s19 + $0x18] sm:$0xff] %v1636_v56  ;;  %v1627_v62 = vadd.f32 %v2293_v30, %v1482_v58  ;;  %v1626_v49 = vadd.f32 %v2294_v63, %v1588_v54  ;;  %v1376_v47 = vpop.permute.xlu1 %1375 }
 0x3aa   : > { %1649 = vst [vmem:[%s3175_s19 + $0x20] sm:$0xff] %v1637_v59  ;;  %v1628_v1 = vadd.f32 %v2295_v45, %v1484_v32  ;;  %v1623_v9 = vadd.f32 %v2296_v2, %v1583_v60  ;;  %v1487_v0 = vpop.f32.mrb[14].mxu1  ;;  %v2054_v3 = vpop.f32.mrb[18].mxu0 }
 0x3ab   : > { %v1639_v12 = vmul.f32 0.70710677, %v1627_v62  ;;  %v1638_v13 = vmul.f32 0.70710677, %v1626_v49  ;;  %v1488_v14 = vadd.f32 %v1487_v0, %v1356_v51  ;;  %v1489_v50 = vpop.f32.mrb[15].mxu1  ;;  %v1598_v17 = vadd.f32 %v2054_v3, %v1356_v51  ;;  %v1592_v19 = vpop.f32.mrb[19].mxu0 }
 0x3ac   : > { %v1640_v22 = vmul.f32 0.70710677, %v1628_v1  ;;  %v1635_v26 = vmul.f32 0.70710677, %v1623_v9  ;;  %v1490_v27 = vadd.f32 %v1489_v50, %v1356_v51  ;;  %v1593_v28 = vadd.f32 %v1592_v19, %v1351_v8  ;;  %v1371_v51 = vpop.permute.xlu0 %1370 }
 0x3ad   : > { %1651 = vst [vmem:[%s3175_s19 + $0x30] sm:$0xff] %v1639_v12  ;;  %1650 = vst [vmem:[%s3175_s19 + $0x28] sm:$0xff] %v1638_v13  ;;  %v1630_v31 = vadd.f32 %v2297_v18, %v1488_v14  ;;  %v1632_v38 = vadd.f32 %v2298_v25, %v1598_v17 }
 0x3ae   : > { %1652 = vst [vmem:[%s3175_s19 + $0x38] sm:$0xff] %v1640_v22  ;;  %1647 = vst [vmem:[%s3175_s19 + $0x10] sm:$0xff] %v1635_v26  ;;  %v1631_v23 = vadd.f32 %v2299_v48, %v1490_v27  ;;  %v1629_v37 = vadd.f32 %v2300_v10, %v1593_v28  ;;  %v1493_v6 = vpop.f32.mrb[16].mxu1  ;;  %v2057_v42 = vpop.f32.mrb[20].mxu0 }
 0x3af   : > { %v1642_v21 = vmul.f32 0.70710677, %v1630_v31  ;;  %v1644_v43 = vmul.f32 0.70710677, %v1632_v38  ;;  %v1494_v20 = vadd.f32 %v1493_v6, %v1361_v61  ;;  %v1495_v34 = vpop.f32.mrb[17].mxu1  ;;  %v1608_v44 = vadd.f32 %v2057_v42, %v3181_v29  ;;  %v1602_v33 = vpop.f32.mrb[21].mxu0 }
 0x3b0   : > { %v1643_v36 = vmul.f32 0.70710677, %v1631_v23  ;;  %v1641_v35 = vmul.f32 0.70710677, %v1629_v37  ;;  %v1496_v39 = vadd.f32 %v1495_v34, %v1361_v61  ;;  %v1603_v46 = vadd.f32 %v1602_v33, %v1361_v61 }
 0x3b1   : > { %1654 = vst [vmem:[%s3175_s19 + $0x48] sm:$0xff] %v1642_v21  ;;  %1656 = vst [vmem:[%s3175_s19 + $0x58] sm:$0xff] %v1644_v43 }
 0x3b2   : > { %1657 = vst [vmem:[%s3213_s5] sm:$0xff] %v1494_v20  ;;  %1662 = vst [vmem:[%s3213_s5 + $0x28] sm:$0xff] %v1608_v44  ;;  %v1499_v24 = vpop.f32.mrb[18].mxu1  ;;  %v2060_v5 = vpop.f32.mrb[22].mxu0 }
 0x3b3   : > { %1655 = vst [vmem:[%s3175_s19 + $0x50] sm:$0xff] %v1643_v36  ;;  %1653 = vst [vmem:[%s3175_s19 + $0x40] sm:$0xff] %v1641_v35  ;;  %v1500_v8 = vadd.f32 %v1499_v24, %v3181_v29  ;;  %v1501_v4 = vpop.f32.mrb[19].mxu1  ;;  %v1618_v7 = vadd.f32 %v2060_v5, %v1376_v47  ;;  %v1612_v11 = vpop.f32.mrb[23].mxu0 }
 0x3b4   : > { %1658 = vst [vmem:[%s3213_s5 + $0x8] sm:$0xff] %v1496_v39  ;;  %1659 = vst [vmem:[%s3213_s5 + $0x10] sm:$0xff] %v1603_v46 }
 0x3b5   : > { %2402 = shalt.err (!%p2399_p13)
}
 0x3b6   : > { %s2403_s23 = scalar_lea.hbm %s3205_s6, 1536  ;;  %s2407_s12 = scalar_lea.hbm %s3375_s20, 3072 }
 0x3b7   : > { %p2404_p5 = scmp.ne.s32.totalorder %s3205_s6, %s2403_s23  ;;  %p2408_p9 = scmp.lt.u32.totalorder %s3205_s6, %s3375_s20 }
 0x3b8   : > { %p2409_p1 = scmp.lt.u32.totalorder %s2407_s12, %s2403_s23  ;;  %p2411_p7 = scmp.lt.u32.totalorder %s2403_s23, %s3205_s6 }
 0x3b9   : > { %p2405_p12 = pnand %p2404_p5, %p3377_p8 }
 0x3ba   : > { %p2410_p3 = por %p2409_p1, %p2408_p9 }
 0x3bb   : > { %p2406_p11 = pneg %p2405_p12 }
 0x3bc   : > { %p2412_p0 = por %p2411_p7, %p2410_p3 }
 0x3be   : > { %p2413_p4 = pnand %p2412_p0, %p2406_p11 }
 0x3c0   : > { %2416 = shalt.err (!%p2413_p4)
}
 0x3c1   : > { %s2524_s9 = smov 384   ;;  %s2525_s11 = smov 24   ;;  %v1502_v41 = vadd.f32 %v1501_v4, %v3181_v29  ;;  %v1613_v52 = vadd.f32 %v1612_v11, %v1371_v51  ;;  %1660 = vst [vmem:[%s3213_s5 + $0x18] sm:$0xff] %v1500_v8  ;;  %1668 = vst [vmem:[%s3213_s5 + $0x58] sm:$0xff] %v1618_v7  ;;  %v1505_v53 = vpop.f32.mrb[20].mxu1 }
 0x3c2   : > { %2148 = dma.vmem_to_hbm [thread:$0]  (%p3377_p8), %s3207_s25, 1536, %s3205_s6, %s1670_s30, %s2524_s9, %s2524_s9, %s2525_s11   ;;  %v1506_v15 = vadd.f32 %v1505_v53, %v1371_v51  ;;  %v1507_v16 = vpop.f32.mrb[21].mxu1 }
 0x3c3   : > { %1661 = vst [vmem:[%s3213_s5 + $0x20] sm:$0xff] %v1502_v41  ;;  %1665 = vst [vmem:[%s3213_s5 + $0x40] sm:$0xff] %v1613_v52  ;;  %v1508_v55 = vadd.f32 %v1507_v16, %v1371_v51  ;;  %s1708_s13 = sshll.u32 %s3213_s5, 4  ;;  %v1511_v56 = vpop.f32.mrb[22].mxu1  ;;  %s3378_s30 = sld [smem:[#allocation27_spill]]  ;;  %s3264_s13 = int_to_ptr.vmem [resolvable:$true] %s1708_s13 }
 0x3c4   : > { %1663 = vst [vmem:[%s3213_s5 + $0x30] sm:$0xff] %v1506_v15  ;;  %v1512_v58 = vadd.f32 %v1511_v56, %v1376_v47  ;;  %v1513_v40 = vpop.f32.mrb[23].mxu1  ;;  %s1675_s27 = scalar_lea.sflag [#allocation11], %s2794_s8  ;;  %s2417_s23 = scalar_lea.vmem %s3264_s13, 1536 }
 0x3c5   : > { %1664 = vst [vmem:[%s3213_s5 + $0x38] sm:$0xff] %v1508_v55  ;;  %v1514_v54 = vadd.f32 %v1513_v40, %v1376_v47  ;;  %p2418_p6 = scmp.ne.s32.totalorder %s3264_s13, %s2417_s23  ;;  %s2526_s28 = smov [#allocation10]  }
 0x3c6   : > { %1666 = vst [vmem:[%s3213_s5 + $0x48] sm:$0xff] %v1512_v58  ;;  %s2421_s16 = sshll.u32 %s2526_s28, 4  ;;  %s2422_s16 = int_to_ptr.vmem [resolvable:$false] %s2421_s16 }
 0x3c7   : > { %1667 = vst [vmem:[%s3213_s5 + $0x50] sm:$0xff] %v1514_v54  ;;  %p2419_p2 = pnand %p2418_p6, %p3377_p8  ;;  %s2423_s24 = scalar_lea.vmem %s2422_s16, 3072 }
 0x3c8   : > { %p2424_p13 = scmp.lt.s32.totalorder %s3264_s13, %s2422_s16  ;;  %p2425_p5 = scmp.lt.s32.totalorder %s2423_s24, %s2417_s23 }
 0x3c9   : > { %s3262_s10 = scalar_lea.hbm %s3378_s30, %s2138_s1  ;;  %p2420_p10 = pneg %p2419_p2 }
 0x3ca   : > { %p2426_p12 = por %p2425_p5, %p2424_p13 }
 0x3cc   : > { %p2427_p11 = pnand %p2426_p12, %p2420_p10 }
 0x3ce   : > { %2430 = shalt.err (!%p2427_p11)
}
 0x3cf   : > { %s2431_s1 = scalar_lea.hbm %s3262_s10, 1536  ;;  %s2435_s19 = scalar_lea.hbm %s3378_s30, 3072 }
 0x3d0   : > { %p2432_p9 = scmp.ne.s32.totalorder %s3262_s10, %s2431_s1  ;;  %p2436_p7 = scmp.lt.u32.totalorder %s3262_s10, %s3378_s30 }
 0x3d1   : > { %p2437_p0 = scmp.lt.u32.totalorder %s2435_s19, %s2431_s1  ;;  %p2439_p6 = scmp.lt.u32.totalorder %s2431_s1, %s3262_s10 }
 0x3d2   : > { %p2433_p1 = pnand %p2432_p9, %p3377_p8 }
 0x3d3   : > { %p2438_p4 = por %p2437_p0, %p2436_p7 }
 0x3d4   : > { %p2434_p3 = pneg %p2433_p1 }
 0x3d5   : > { %p2440_p2 = por %p2439_p6, %p2438_p4 }
 0x3d7   : > { %p2441_p10 = pnand %p2440_p2, %p2434_p3 }
 0x3d9   : > { %2444 = shalt.err (!%p2441_p10)
}
 0x3da   : > { %2149 = dma.vmem_to_hbm [thread:$0]  (%p3377_p8), %s3264_s13, 1536, %s3262_s10, %s1675_s27, %s2524_s9, %s2524_s9, %s2525_s11  }
 0x3db PF: > { %s3379_s6 = sld [smem:[#allocation17_spill]]  ;;  %s3380_s23 = sld [smem:[#allocation19_spill]] }
 0x3dc   : > { %p3382_p5 = scmp.ge.s32.totalorder %s2511_s18, 2 }
 0x3e1   : > { %s1723_s28 = sand.u32 1, %s3379_s6   ;;  %p3381_p13 = scmp.ne.s32.totalorder %s3380_s23, 0 }
 0x3e2   : > { %s1724_s16 = scalar_lea.sflag [#allocation5], %s1723_s28 }
 0x3e3   : > { %p2164_p12 = pnand %p3382_p5, %p3381_p13 }
 0x3e5   : > { %2482 = dma.done.wait (!%p2164_p12), %s1724_s16, 1536  }
 0x3e6   : > { %2484 = vsyncadd (!%p2164_p12), %s1724_s16, 4294965760  ;;  %s1733_s26 = scalar_lea.sflag [#allocation11], %s1723_s28 }
 0x3e7   : > { %2486 = dma.done.wait (!%p2164_p12), %s1733_s26, 1536  }
 0x3e8   : > { %2488 = vsyncadd (!%p2164_p12), %s1733_s26, 4294965760  ;;  %s33_s18 = sadd.s32 1, %s2511_s18   ;;  %s3383_s8 = sld [smem:[#allocation21_spill]] }
 0x3e9   : > { %p30_p11 = scmp.ge.s32.totalorder %s33_s18, 4   ;;  %s3384_s9 = sld [smem:[#allocation20_spill]] }
 0x3ea   : > { %s3385_s13 = smov %s2495_s14  ;;  %s3386_s14 = smov %s2499_s15 }
 0x3eb   : > { %s3388_s16 = smov %s2507_s17  ;;  %32 = sbr.rel (!%p30_p11) target bundleno = 17 (0x11), region = 144 }
 0x3ee   : > { %s3387_s15 = smov %s3383_s8 }
 0x3ef   : > { %s3389_s17 = smov %s3384_s9 }
 0x3f2   :  { %1738 = vsyncpa [#allocation4], 1 }
 0x3f3   :  { %1740 = vsyncpa [#allocation4 + $0x1], 1 }
 0x3f4   :  { %1741 = vsyncpa [#allocation7], 1 }
 0x3f5   :  { %1743 = vsyncpa [#allocation7 + $0x1], 1 }
 0x3f6   :  { %1744 = vsyncpa [#allocation5], 1 }
 0x3f7   :  { %1746 = vsyncpa [#allocation5 + $0x1], 1 }
 0x3f8   :  { %1747 = vsyncpa [#allocation11], 1 }
 0x3f9   :  { %1749 = vsyncpa [#allocation11 + $0x1], 1 }

</bundles_post_ra>
